<compile_context>
chip_gen: v7x
topology: tpu7x:2x2x1
jax: 0.10.0
libtpu: 0.0.40
codegen_flags: <defaults>
</compile_context>

<pallas_src>
import jax
import jax.numpy as jnp
from jax import lax
from jax.experimental import pallas as pl
from jax.experimental.pallas import tpu as pltpu

K = 5                 # conv kernel width
PAD = (K - 1) // 2    # 'same' padding for odd kernel width


def residual_block_kernel(x_ref, w_ref, b_ref, out_ref, col_ref):
    # x_ref:   (BB, C, L)   f32  input block, NCL (C on sublanes, L on lanes)
    # w_ref:   (C, K*C)     bf16 im2col weights: w[co, k*C + ci] = weight[co, ci, k]
    # b_ref:   (C, 1)       f32  bias
    # out_ref: (BB, C, L)   f32
    # col_ref: (K*C, BB*L)  bf16 reused im2col scratch (shared by both convs)
    BB, C, L = x_ref.shape

    w_bf16 = w_ref[...]                         # already bf16 (cast hoisted to wrapper)
    b_col = b_ref[...]                          # (C, 1) f32

    # Hoisted per-tap boundary masks on a single (1, L) iota row; reused for
    # every batch and for BOTH convs (zero 'same' padding inside each segment).
    pos = lax.broadcasted_iota(jnp.int32, (1, L), 1)
    masks = {s: (pos + s >= 0) & (pos + s < L)
             for s in range(-PAD, PAD + 1) if s != 0}

    def fill_im2col(tile_fn):
        # tile_fn(b) -> (C, L) bf16 conv-input tile for batch b.
        # Shifted taps (XLU roll + hoisted masks, all bf16) are written into
        # the shared VMEM scratch with sublane/lane-aligned slice stores.
        for b in range(BB):
            v = tile_fn(b)                       # (C, L) bf16
            base = b * L
            for k in range(K):
                s = k - PAD
                if s == 0:
                    tap = v
                else:
                    shifted = jnp.roll(v, -s, axis=1)   # out[:, j] = v[:, j+s]
                    tap = jnp.where(masks[s], shifted, jnp.zeros_like(shifted))
                col_ref[k * C:(k + 1) * C, base:base + L] = tap

    # conv #1: single (C, K*C) @ (K*C, BB*L) MXU matmul, f32 accumulation.
    fill_im2col(lambda b: x_ref[b].astype(jnp.bfloat16))
    y1 = jnp.dot(w_bf16, col_ref[...], preferred_element_type=jnp.float32)
    h_bf16 = jnp.maximum(y1 + b_col, 0.0).astype(jnp.bfloat16)   # cast once

    # conv #2 (shared weights) + bias + residual; per-batch lane-dense stores.
    fill_im2col(lambda b: h_bf16[:, b * L:(b + 1) * L])
    y2 = jnp.dot(w_bf16, col_ref[...], preferred_element_type=jnp.float32)
    for b in range(BB):
        out_ref[b] = (y2[:, b * L:(b + 1) * L] + b_col
                      + x_ref[b]).astype(out_ref.dtype)


def _pick_batches_per_block(B, L):
    """Widest block with <= 1024 packed lanes that keeps >= 2 grid steps."""
    divisors = [d for d in range(1, B + 1) if B % d == 0]
    ok = [d for d in divisors if d * L <= 1024 and B // d >= 2]
    if ok:
        return max(ok)
    ok = [d for d in divisors if d * L <= 1024]
    return max(ok) if ok else 1


def residual_block(x_ncl, weight, bias, *, batches_per_block=None):
    """x_ncl: (B, C, L) f32; weight: (C_out=C, C_in=C, K); bias: (C,)."""
    B, C, L = x_ncl.shape
    assert weight.shape == (C, C, K) and bias.shape == (C,)
    # TODO(synk): support L % 128 != 0 (needs in-kernel tail masking of h
    # between the two convs); for now require the lane-dense fast path.
    assert L % 128 == 0, "L must be a multiple of 128 (lane-dense layout)"

    BB = (batches_per_block if batches_per_block is not None
          else _pick_batches_per_block(B, L))
    assert B % BB == 0, "batch must be divisible by batches_per_block"

    # im2col weight layout: (C_out, K*C_in), rows tap-major / channel-minor.
    w2 = jnp.transpose(weight, (0, 2, 1)).reshape(C, K * C).astype(jnp.bfloat16)
    b2 = bias.reshape(C, 1).astype(jnp.float32)

    cost = pl.CostEstimate(
        flops=2 * (2 * C * C * K) * B * L,                 # two convs
        transcendentals=0,
        bytes_accessed=2 * 4 * B * C * L + 2 * C * K * C + 4 * C,
    )

    return pl.pallas_call(
        residual_block_kernel,
        out_shape=jax.ShapeDtypeStruct((B, C, L), x_ncl.dtype),
        grid_spec=pltpu.PrefetchScalarGridSpec(
            num_scalar_prefetch=0,
            grid=(B // BB,),
            in_specs=[
                pl.BlockSpec((BB, C, L), lambda i: (i, 0, 0)),
                pl.BlockSpec((C, K * C), lambda i: (0, 0)),
                pl.BlockSpec((C, 1), lambda i: (0, 0)),
            ],
            out_specs=pl.BlockSpec((BB, C, L), lambda i: (i, 0, 0)),
            scratch_shapes=[pltpu.VMEM((K * C, BB * L), jnp.bfloat16)],
        ),
        compiler_params=pltpu.CompilerParams(
            dimension_semantics=("parallel",),
            vmem_limit_bytes=32 * 1024 * 1024),
        cost_estimate=cost,
    )(x_ncl, w2, b2)


def reference(x, weight, bias):
    """Plain-JAX (f32) reference mirroring the PyTorch forward."""
    dn = lax.conv_dimension_numbers(x.shape, weight.shape,
                                    ('NCH', 'OIH', 'NCH'))

    def conv(v):
        return lax.conv_general_dilated(
            v, weight, (1,), 'SAME', dimension_numbers=dn
        ) + bias[None, :, None]

    h = jnp.maximum(conv(x), 0.0)          # conv -> ReLU (inplace in torch)
    return conv(h) + x                     # conv again (same weights) + residual


if __name__ == "__main__":
    # num_neurons = 32; L lane-dense. BB=4 -> 512 packed lanes/matmul, grid=2.
    B, C, L = 8, 32, 128
    key = jax.random.PRNGKey(0)
    k1, k2, k3 = jax.random.split(key, 3)

    # Deterministic init, matching PyTorch Conv1d default uniform bound.
    bound = 1.0 / (C * K) ** 0.5
    weight = jax.random.uniform(k1, (C, C, K), jnp.float32, -bound, bound)
    bias = jax.random.uniform(k2, (C,), jnp.float32, -bound, bound)
    x = jax.random.normal(k3, (B, C, L), jnp.float32)

    out = jax.block_until_ready(residual_block(x, weight, bias))
    ref = reference(x, weight, bias)

    # bf16 MXU operands with f32 accumulation -> looser tolerance than pure f32.
    assert out.shape == ref.shape
    assert jnp.allclose(out, ref, atol=5e-2, rtol=5e-2), \
        float(jnp.max(jnp.abs(out - ref)))
    print("KERNEL_OK")
</pallas_src>

<mosaic_0001>
module attributes {stable_mosaic.version = 11 : i64} {
  func.func @residual_block_kernel(%arg0: i32, %arg1: memref<4x32x128xf32, #tpu.memory_space<vmem>>, %arg2: memref<32x160xbf16, #tpu.memory_space<vmem>>, %arg3: memref<32x1xf32, #tpu.memory_space<vmem>>, %arg4: memref<4x32x128xf32, #tpu.memory_space<vmem>>, %arg5: memref<160x512xbf16, #tpu.memory_space<vmem>>) attributes {dimension_semantics = [#tpu.dimension_semantics<parallel>], iteration_bounds = array<i64: 2>, scalar_prefetch = 0 : i64, scratch_operands = 1 : i64, tpu.core_type = #tpu.core_type<tc>, window_params = [{transform_indices = @transform_0, window_bounds = array<i64: 4, 32, 128>}, {pipeline_mode = #tpu.pipeline_mode<synchronous>, transform_indices = @transform_1, window_bounds = array<i64: 32, 160>}, {pipeline_mode = #tpu.pipeline_mode<synchronous>, transform_indices = @transform_2, window_bounds = array<i64: 32, 1>}, {transform_indices = @transform_3, window_bounds = array<i64: 4, 32, 128>}]} {
    %c0 = arith.constant 0 : index
    %c0_0 = arith.constant 0 : index
    %0 = vector.load %arg2[%c0, %c0_0] : memref<32x160xbf16, #tpu.memory_space<vmem>>, vector<32x160xbf16>
    %c0_1 = arith.constant 0 : index
    %c0_2 = arith.constant 0 : index
    %1 = vector.load %arg3[%c0_1, %c0_2] : memref<32x1xf32, #tpu.memory_space<vmem>>, vector<32x1xf32>
    %2 = tpu.iota {dimensions = array<i32: 1>} : vector<1x128xi32>
    %c-2_i32 = arith.constant -2 : i32
    %3 = vector.broadcast %c-2_i32 : i32 to vector<1x128xi32>
    %4 = arith.addi %2, %3 : vector<1x128xi32>
    %c0_i32 = arith.constant 0 : i32
    %5 = vector.broadcast %c0_i32 : i32 to vector<1x128xi32>
    %6 = arith.cmpi sge, %4, %5 : vector<1x128xi32>
    %c-2_i32_3 = arith.constant -2 : i32
    %7 = vector.broadcast %c-2_i32_3 : i32 to vector<1x128xi32>
    %8 = arith.addi %2, %7 : vector<1x128xi32>
    %c128_i32 = arith.constant 128 : i32
    %9 = vector.broadcast %c128_i32 : i32 to vector<1x128xi32>
    %10 = arith.cmpi slt, %8, %9 : vector<1x128xi32>
    %11 = arith.andi %6, %10 : vector<1x128xi1>
    %c-1_i32 = arith.constant -1 : i32
    %12 = vector.broadcast %c-1_i32 : i32 to vector<1x128xi32>
    %13 = arith.addi %2, %12 : vector<1x128xi32>
    %c0_i32_4 = arith.constant 0 : i32
    %14 = vector.broadcast %c0_i32_4 : i32 to vector<1x128xi32>
    %15 = arith.cmpi sge, %13, %14 : vector<1x128xi32>
    %c-1_i32_5 = arith.constant -1 : i32
    %16 = vector.broadcast %c-1_i32_5 : i32 to vector<1x128xi32>
    %17 = arith.addi %2, %16 : vector<1x128xi32>
    %c128_i32_6 = arith.constant 128 : i32
    %18 = vector.broadcast %c128_i32_6 : i32 to vector<1x128xi32>
    %19 = arith.cmpi slt, %17, %18 : vector<1x128xi32>
    %20 = arith.andi %15, %19 : vector<1x128xi1>
    %c1_i32 = arith.constant 1 : i32
    %21 = vector.broadcast %c1_i32 : i32 to vector<1x128xi32>
    %22 = arith.addi %2, %21 : vector<1x128xi32>
    %c0_i32_7 = arith.constant 0 : i32
    %23 = vector.broadcast %c0_i32_7 : i32 to vector<1x128xi32>
    %24 = arith.cmpi sge, %22, %23 : vector<1x128xi32>
    %c1_i32_8 = arith.constant 1 : i32
    %25 = vector.broadcast %c1_i32_8 : i32 to vector<1x128xi32>
    %26 = arith.addi %2, %25 : vector<1x128xi32>
    %c128_i32_9 = arith.constant 128 : i32
    %27 = vector.broadcast %c128_i32_9 : i32 to vector<1x128xi32>
    %28 = arith.cmpi slt, %26, %27 : vector<1x128xi32>
    %29 = arith.andi %24, %28 : vector<1x128xi1>
    %c2_i32 = arith.constant 2 : i32
    %30 = vector.broadcast %c2_i32 : i32 to vector<1x128xi32>
    %31 = arith.addi %2, %30 : vector<1x128xi32>
    %c0_i32_10 = arith.constant 0 : i32
    %32 = vector.broadcast %c0_i32_10 : i32 to vector<1x128xi32>
    %33 = arith.cmpi sge, %31, %32 : vector<1x128xi32>
    %c2_i32_11 = arith.constant 2 : i32
    %34 = vector.broadcast %c2_i32_11 : i32 to vector<1x128xi32>
    %35 = arith.addi %2, %34 : vector<1x128xi32>
    %c128_i32_12 = arith.constant 128 : i32
    %36 = vector.broadcast %c128_i32_12 : i32 to vector<1x128xi32>
    %37 = arith.cmpi slt, %35, %36 : vector<1x128xi32>
    %38 = arith.andi %33, %37 : vector<1x128xi1>
    %c0_13 = arith.constant 0 : index
    %c0_14 = arith.constant 0 : index
    %c0_15 = arith.constant 0 : index
    %39 = vector.load %arg1[%c0_13, %c0_14, %c0_15] : memref<4x32x128xf32, #tpu.memory_space<vmem>>, vector<1x32x128xf32>
    %40 = vector.shape_cast %39 : vector<1x32x128xf32> to vector<32x128xf32>
    %41 = arith.truncf %40 : vector<32x128xf32> to vector<32x128xbf16>
    %42 = vector.extract_strided_slice %41 {offsets = [0, 126], sizes = [32, 2], strides = [1, 1]} : vector<32x128xbf16> to vector<32x2xbf16>
    %43 = vector.extract_strided_slice %41 {offsets = [0, 0], sizes = [32, 126], strides = [1, 1]} : vector<32x128xbf16> to vector<32x126xbf16>
    %44 = tpu.concatenate %42, %43 in 1 : vector<32x2xbf16>, vector<32x126xbf16> -> vector<32x128xbf16>
    %cst = arith.constant 0.000000e+00 : bf16
    %45 = vector.broadcast %cst : bf16 to vector<32x128xbf16>
    %46 = vector.shape_cast %11 : vector<1x128xi1> to vector<1x128xi1>
    %47 = vector.broadcast %46 : vector<1x128xi1> to vector<32x128xi1>
    %48 = arith.select %47, %44, %45 : vector<32x128xi1>, vector<32x128xbf16>
    %c0_16 = arith.constant 0 : index
    %c0_17 = arith.constant 0 : index
    %49 = vector.load %arg5[%c0_16, %c0_17] : memref<160x512xbf16, #tpu.memory_space<vmem>>, vector<32x128xbf16>
    tpu.vector_store %arg5[%c0_16, %c0_17], %48 {strides = array<i32>} : memref<160x512xbf16, #tpu.memory_space<vmem>>, vector<32x128xbf16>,
    %50 = vector.extract_strided_slice %41 {offsets = [0, 127], sizes = [32, 1], strides = [1, 1]} : vector<32x128xbf16> to vector<32x1xbf16>
    %51 = vector.extract_strided_slice %41 {offsets = [0, 0], sizes = [32, 127], strides = [1, 1]} : vector<32x128xbf16> to vector<32x127xbf16>
    %52 = tpu.concatenate %50, %51 in 1 : vector<32x1xbf16>, vector<32x127xbf16> -> vector<32x128xbf16>
    %cst_18 = arith.constant 0.000000e+00 : bf16
    %53 = vector.broadcast %cst_18 : bf16 to vector<32x128xbf16>
    %54 = vector.shape_cast %20 : vector<1x128xi1> to vector<1x128xi1>
    %55 = vector.broadcast %54 : vector<1x128xi1> to vector<32x128xi1>
    %56 = arith.select %55, %52, %53 : vector<32x128xi1>, vector<32x128xbf16>
    %c32 = arith.constant 32 : index
    %c0_19 = arith.constant 0 : index
    %57 = vector.load %arg5[%c32, %c0_19] : memref<160x512xbf16, #tpu.memory_space<vmem>>, vector<32x128xbf16>
    tpu.vector_store %arg5[%c32, %c0_19], %56 {strides = array<i32>} : memref<160x512xbf16, #tpu.memory_space<vmem>>, vector<32x128xbf16>,
    %c64 = arith.constant 64 : index
    %c0_20 = arith.constant 0 : index
    %58 = vector.load %arg5[%c64, %c0_20] : memref<160x512xbf16, #tpu.memory_space<vmem>>, vector<32x128xbf16>
    tpu.vector_store %arg5[%c64, %c0_20], %41 {strides = array<i32>} : memref<160x512xbf16, #tpu.memory_space<vmem>>, vector<32x128xbf16>,
    %59 = vector.extract_strided_slice %41 {offsets = [0, 1], sizes = [32, 127], strides = [1, 1]} : vector<32x128xbf16> to vector<32x127xbf16>
    %60 = vector.extract_strided_slice %41 {offsets = [0, 0], sizes = [32, 1], strides = [1, 1]} : vector<32x128xbf16> to vector<32x1xbf16>
    %61 = tpu.concatenate %59, %60 in 1 : vector<32x127xbf16>, vector<32x1xbf16> -> vector<32x128xbf16>
    %cst_21 = arith.constant 0.000000e+00 : bf16
    %62 = vector.broadcast %cst_21 : bf16 to vector<32x128xbf16>
    %63 = vector.shape_cast %29 : vector<1x128xi1> to vector<1x128xi1>
    %64 = vector.broadcast %63 : vector<1x128xi1> to vector<32x128xi1>
    %65 = arith.select %64, %61, %62 : vector<32x128xi1>, vector<32x128xbf16>
    %c96 = arith.constant 96 : index
    %c0_22 = arith.constant 0 : index
    %66 = vector.load %arg5[%c96, %c0_22] : memref<160x512xbf16, #tpu.memory_space<vmem>>, vector<32x128xbf16>
    tpu.vector_store %arg5[%c96, %c0_22], %65 {strides = array<i32>} : memref<160x512xbf16, #tpu.memory_space<vmem>>, vector<32x128xbf16>,
    %67 = vector.extract_strided_slice %41 {offsets = [0, 2], sizes = [32, 126], strides = [1, 1]} : vector<32x128xbf16> to vector<32x126xbf16>
    %68 = vector.extract_strided_slice %41 {offsets = [0, 0], sizes = [32, 2], strides = [1, 1]} : vector<32x128xbf16> to vector<32x2xbf16>
    %69 = tpu.concatenate %67, %68 in 1 : vector<32x126xbf16>, vector<32x2xbf16> -> vector<32x128xbf16>
    %cst_23 = arith.constant 0.000000e+00 : bf16
    %70 = vector.broadcast %cst_23 : bf16 to vector<32x128xbf16>
    %71 = vector.shape_cast %38 : vector<1x128xi1> to vector<1x128xi1>
    %72 = vector.broadcast %71 : vector<1x128xi1> to vector<32x128xi1>
    %73 = arith.select %72, %69, %70 : vector<32x128xi1>, vector<32x128xbf16>
    %c128 = arith.constant 128 : index
    %c0_24 = arith.constant 0 : index
    %74 = vector.load %arg5[%c128, %c0_24] : memref<160x512xbf16, #tpu.memory_space<vmem>>, vector<32x128xbf16>
    tpu.vector_store %arg5[%c128, %c0_24], %73 {strides = array<i32>} : memref<160x512xbf16, #tpu.memory_space<vmem>>, vector<32x128xbf16>,
    %c1 = arith.constant 1 : index
    %c0_25 = arith.constant 0 : index
    %c0_26 = arith.constant 0 : index
    %75 = vector.load %arg1[%c1, %c0_25, %c0_26] : memref<4x32x128xf32, #tpu.memory_space<vmem>>, vector<1x32x128xf32>
    %76 = vector.shape_cast %75 : vector<1x32x128xf32> to vector<32x128xf32>
    %77 = arith.truncf %76 : vector<32x128xf32> to vector<32x128xbf16>
    %78 = vector.extract_strided_slice %77 {offsets = [0, 126], sizes = [32, 2], strides = [1, 1]} : vector<32x128xbf16> to vector<32x2xbf16>
    %79 = vector.extract_strided_slice %77 {offsets = [0, 0], sizes = [32, 126], strides = [1, 1]} : vector<32x128xbf16> to vector<32x126xbf16>
    %80 = tpu.concatenate %78, %79 in 1 : vector<32x2xbf16>, vector<32x126xbf16> -> vector<32x128xbf16>
    %cst_27 = arith.constant 0.000000e+00 : bf16
    %81 = vector.broadcast %cst_27 : bf16 to vector<32x128xbf16>
    %82 = vector.shape_cast %11 : vector<1x128xi1> to vector<1x128xi1>
    %83 = vector.broadcast %82 : vector<1x128xi1> to vector<32x128xi1>
    %84 = arith.select %83, %80, %81 : vector<32x128xi1>, vector<32x128xbf16>
    %c0_28 = arith.constant 0 : index
    %c128_29 = arith.constant 128 : index
    %85 = vector.load %arg5[%c0_28, %c128_29] : memref<160x512xbf16, #tpu.memory_space<vmem>>, vector<32x128xbf16>
    tpu.vector_store %arg5[%c0_28, %c128_29], %84 {strides = array<i32>} : memref<160x512xbf16, #tpu.memory_space<vmem>>, vector<32x128xbf16>,
    %86 = vector.extract_strided_slice %77 {offsets = [0, 127], sizes = [32, 1], strides = [1, 1]} : vector<32x128xbf16> to vector<32x1xbf16>
    %87 = vector.extract_strided_slice %77 {offsets = [0, 0], sizes = [32, 127], strides = [1, 1]} : vector<32x128xbf16> to vector<32x127xbf16>
    %88 = tpu.concatenate %86, %87 in 1 : vector<32x1xbf16>, vector<32x127xbf16> -> vector<32x128xbf16>
    %cst_30 = arith.constant 0.000000e+00 : bf16
    %89 = vector.broadcast %cst_30 : bf16 to vector<32x128xbf16>
    %90 = vector.shape_cast %20 : vector<1x128xi1> to vector<1x128xi1>
    %91 = vector.broadcast %90 : vector<1x128xi1> to vector<32x128xi1>
    %92 = arith.select %91, %88, %89 : vector<32x128xi1>, vector<32x128xbf16>
    %c32_31 = arith.constant 32 : index
    %c128_32 = arith.constant 128 : index
    %93 = vector.load %arg5[%c32_31, %c128_32] : memref<160x512xbf16, #tpu.memory_space<vmem>>, vector<32x128xbf16>
    tpu.vector_store %arg5[%c32_31, %c128_32], %92 {strides = array<i32>} : memref<160x512xbf16, #tpu.memory_space<vmem>>, vector<32x128xbf16>,
    %c64_33 = arith.constant 64 : index
    %c128_34 = arith.constant 128 : index
    %94 = vector.load %arg5[%c64_33, %c128_34] : memref<160x512xbf16, #tpu.memory_space<vmem>>, vector<32x128xbf16>
    tpu.vector_store %arg5[%c64_33, %c128_34], %77 {strides = array<i32>} : memref<160x512xbf16, #tpu.memory_space<vmem>>, vector<32x128xbf16>,
    %95 = vector.extract_strided_slice %77 {offsets = [0, 1], sizes = [32, 127], strides = [1, 1]} : vector<32x128xbf16> to vector<32x127xbf16>
    %96 = vector.extract_strided_slice %77 {offsets = [0, 0], sizes = [32, 1], strides = [1, 1]} : vector<32x128xbf16> to vector<32x1xbf16>
    %97 = tpu.concatenate %95, %96 in 1 : vector<32x127xbf16>, vector<32x1xbf16> -> vector<32x128xbf16>
    %cst_35 = arith.constant 0.000000e+00 : bf16
    %98 = vector.broadcast %cst_35 : bf16 to vector<32x128xbf16>
    %99 = vector.shape_cast %29 : vector<1x128xi1> to vector<1x128xi1>
    %100 = vector.broadcast %99 : vector<1x128xi1> to vector<32x128xi1>
    %101 = arith.select %100, %97, %98 : vector<32x128xi1>, vector<32x128xbf16>
    %c96_36 = arith.constant 96 : index
    %c128_37 = arith.constant 128 : index
    %102 = vector.load %arg5[%c96_36, %c128_37] : memref<160x512xbf16, #tpu.memory_space<vmem>>, vector<32x128xbf16>
    tpu.vector_store %arg5[%c96_36, %c128_37], %101 {strides = array<i32>} : memref<160x512xbf16, #tpu.memory_space<vmem>>, vector<32x128xbf16>,
    %103 = vector.extract_strided_slice %77 {offsets = [0, 2], sizes = [32, 126], strides = [1, 1]} : vector<32x128xbf16> to vector<32x126xbf16>
    %104 = vector.extract_strided_slice %77 {offsets = [0, 0], sizes = [32, 2], strides = [1, 1]} : vector<32x128xbf16> to vector<32x2xbf16>
    %105 = tpu.concatenate %103, %104 in 1 : vector<32x126xbf16>, vector<32x2xbf16> -> vector<32x128xbf16>
    %cst_38 = arith.constant 0.000000e+00 : bf16
    %106 = vector.broadcast %cst_38 : bf16 to vector<32x128xbf16>
    %107 = vector.shape_cast %38 : vector<1x128xi1> to vector<1x128xi1>
    %108 = vector.broadcast %107 : vector<1x128xi1> to vector<32x128xi1>
    %109 = arith.select %108, %105, %106 : vector<32x128xi1>, vector<32x128xbf16>
    %c128_39 = arith.constant 128 : index
    %c128_40 = arith.constant 128 : index
    %110 = vector.load %arg5[%c128_39, %c128_40] : memref<160x512xbf16, #tpu.memory_space<vmem>>, vector<32x128xbf16>
    tpu.vector_store %arg5[%c128_39, %c128_40], %109 {strides = array<i32>} : memref<160x512xbf16, #tpu.memory_space<vmem>>, vector<32x128xbf16>,
    %c2 = arith.constant 2 : index
    %c0_41 = arith.constant 0 : index
    %c0_42 = arith.constant 0 : index
    %111 = vector.load %arg1[%c2, %c0_41, %c0_42] : memref<4x32x128xf32, #tpu.memory_space<vmem>>, vector<1x32x128xf32>
    %112 = vector.shape_cast %111 : vector<1x32x128xf32> to vector<32x128xf32>
    %113 = arith.truncf %112 : vector<32x128xf32> to vector<32x128xbf16>
    %114 = vector.extract_strided_slice %113 {offsets = [0, 126], sizes = [32, 2], strides = [1, 1]} : vector<32x128xbf16> to vector<32x2xbf16>
    %115 = vector.extract_strided_slice %113 {offsets = [0, 0], sizes = [32, 126], strides = [1, 1]} : vector<32x128xbf16> to vector<32x126xbf16>
    %116 = tpu.concatenate %114, %115 in 1 : vector<32x2xbf16>, vector<32x126xbf16> -> vector<32x128xbf16>
    %cst_43 = arith.constant 0.000000e+00 : bf16
    %117 = vector.broadcast %cst_43 : bf16 to vector<32x128xbf16>
    %118 = vector.shape_cast %11 : vector<1x128xi1> to vector<1x128xi1>
    %119 = vector.broadcast %118 : vector<1x128xi1> to vector<32x128xi1>
    %120 = arith.select %119, %116, %117 : vector<32x128xi1>, vector<32x128xbf16>
    %c0_44 = arith.constant 0 : index
    %c256 = arith.constant 256 : index
    %121 = vector.load %arg5[%c0_44, %c256] : memref<160x512xbf16, #tpu.memory_space<vmem>>, vector<32x128xbf16>
    tpu.vector_store %arg5[%c0_44, %c256], %120 {strides = array<i32>} : memref<160x512xbf16, #tpu.memory_space<vmem>>, vector<32x128xbf16>,
    %122 = vector.extract_strided_slice %113 {offsets = [0, 127], sizes = [32, 1], strides = [1, 1]} : vector<32x128xbf16> to vector<32x1xbf16>
    %123 = vector.extract_strided_slice %113 {offsets = [0, 0], sizes = [32, 127], strides = [1, 1]} : vector<32x128xbf16> to vector<32x127xbf16>
    %124 = tpu.concatenate %122, %123 in 1 : vector<32x1xbf16>, vector<32x127xbf16> -> vector<32x128xbf16>
    %cst_45 = arith.constant 0.000000e+00 : bf16
    %125 = vector.broadcast %cst_45 : bf16 to vector<32x128xbf16>
    %126 = vector.shape_cast %20 : vector<1x128xi1> to vector<1x128xi1>
    %127 = vector.broadcast %126 : vector<1x128xi1> to vector<32x128xi1>
    %128 = arith.select %127, %124, %125 : vector<32x128xi1>, vector<32x128xbf16>
    %c32_46 = arith.constant 32 : index
    %c256_47 = arith.constant 256 : index
    %129 = vector.load %arg5[%c32_46, %c256_47] : memref<160x512xbf16, #tpu.memory_space<vmem>>, vector<32x128xbf16>
    tpu.vector_store %arg5[%c32_46, %c256_47], %128 {strides = array<i32>} : memref<160x512xbf16, #tpu.memory_space<vmem>>, vector<32x128xbf16>,
    %c64_48 = arith.constant 64 : index
    %c256_49 = arith.constant 256 : index
    %130 = vector.load %arg5[%c64_48, %c256_49] : memref<160x512xbf16, #tpu.memory_space<vmem>>, vector<32x128xbf16>
    tpu.vector_store %arg5[%c64_48, %c256_49], %113 {strides = array<i32>} : memref<160x512xbf16, #tpu.memory_space<vmem>>, vector<32x128xbf16>,
    %131 = vector.extract_strided_slice %113 {offsets = [0, 1], sizes = [32, 127], strides = [1, 1]} : vector<32x128xbf16> to vector<32x127xbf16>
    %132 = vector.extract_strided_slice %113 {offsets = [0, 0], sizes = [32, 1], strides = [1, 1]} : vector<32x128xbf16> to vector<32x1xbf16>
    %133 = tpu.concatenate %131, %132 in 1 : vector<32x127xbf16>, vector<32x1xbf16> -> vector<32x128xbf16>
    %cst_50 = arith.constant 0.000000e+00 : bf16
    %134 = vector.broadcast %cst_50 : bf16 to vector<32x128xbf16>
    %135 = vector.shape_cast %29 : vector<1x128xi1> to vector<1x128xi1>
    %136 = vector.broadcast %135 : vector<1x128xi1> to vector<32x128xi1>
    %137 = arith.select %136, %133, %134 : vector<32x128xi1>, vector<32x128xbf16>
    %c96_51 = arith.constant 96 : index
    %c256_52 = arith.constant 256 : index
    %138 = vector.load %arg5[%c96_51, %c256_52] : memref<160x512xbf16, #tpu.memory_space<vmem>>, vector<32x128xbf16>
    tpu.vector_store %arg5[%c96_51, %c256_52], %137 {strides = array<i32>} : memref<160x512xbf16, #tpu.memory_space<vmem>>, vector<32x128xbf16>,
    %139 = vector.extract_strided_slice %113 {offsets = [0, 2], sizes = [32, 126], strides = [1, 1]} : vector<32x128xbf16> to vector<32x126xbf16>
    %140 = vector.extract_strided_slice %113 {offsets = [0, 0], sizes = [32, 2], strides = [1, 1]} : vector<32x128xbf16> to vector<32x2xbf16>
    %141 = tpu.concatenate %139, %140 in 1 : vector<32x126xbf16>, vector<32x2xbf16> -> vector<32x128xbf16>
    %cst_53 = arith.constant 0.000000e+00 : bf16
    %142 = vector.broadcast %cst_53 : bf16 to vector<32x128xbf16>
    %143 = vector.shape_cast %38 : vector<1x128xi1> to vector<1x128xi1>
    %144 = vector.broadcast %143 : vector<1x128xi1> to vector<32x128xi1>
    %145 = arith.select %144, %141, %142 : vector<32x128xi1>, vector<32x128xbf16>
    %c128_54 = arith.constant 128 : index
    %c256_55 = arith.constant 256 : index
    %146 = vector.load %arg5[%c128_54, %c256_55] : memref<160x512xbf16, #tpu.memory_space<vmem>>, vector<32x128xbf16>
    tpu.vector_store %arg5[%c128_54, %c256_55], %145 {strides = array<i32>} : memref<160x512xbf16, #tpu.memory_space<vmem>>, vector<32x128xbf16>,
    %c3 = arith.constant 3 : index
    %c0_56 = arith.constant 0 : index
    %c0_57 = arith.constant 0 : index
    %147 = vector.load %arg1[%c3, %c0_56, %c0_57] : memref<4x32x128xf32, #tpu.memory_space<vmem>>, vector<1x32x128xf32>
    %148 = vector.shape_cast %147 : vector<1x32x128xf32> to vector<32x128xf32>
    %149 = arith.truncf %148 : vector<32x128xf32> to vector<32x128xbf16>
    %150 = vector.extract_strided_slice %149 {offsets = [0, 126], sizes = [32, 2], strides = [1, 1]} : vector<32x128xbf16> to vector<32x2xbf16>
    %151 = vector.extract_strided_slice %149 {offsets = [0, 0], sizes = [32, 126], strides = [1, 1]} : vector<32x128xbf16> to vector<32x126xbf16>
    %152 = tpu.concatenate %150, %151 in 1 : vector<32x2xbf16>, vector<32x126xbf16> -> vector<32x128xbf16>
    %cst_58 = arith.constant 0.000000e+00 : bf16
    %153 = vector.broadcast %cst_58 : bf16 to vector<32x128xbf16>
    %154 = vector.shape_cast %11 : vector<1x128xi1> to vector<1x128xi1>
    %155 = vector.broadcast %154 : vector<1x128xi1> to vector<32x128xi1>
    %156 = arith.select %155, %152, %153 : vector<32x128xi1>, vector<32x128xbf16>
    %c0_59 = arith.constant 0 : index
    %c384 = arith.constant 384 : index
    %157 = vector.load %arg5[%c0_59, %c384] : memref<160x512xbf16, #tpu.memory_space<vmem>>, vector<32x128xbf16>
    tpu.vector_store %arg5[%c0_59, %c384], %156 {strides = array<i32>} : memref<160x512xbf16, #tpu.memory_space<vmem>>, vector<32x128xbf16>,
    %158 = vector.extract_strided_slice %149 {offsets = [0, 127], sizes = [32, 1], strides = [1, 1]} : vector<32x128xbf16> to vector<32x1xbf16>
    %159 = vector.extract_strided_slice %149 {offsets = [0, 0], sizes = [32, 127], strides = [1, 1]} : vector<32x128xbf16> to vector<32x127xbf16>
    %160 = tpu.concatenate %158, %159 in 1 : vector<32x1xbf16>, vector<32x127xbf16> -> vector<32x128xbf16>
    %cst_60 = arith.constant 0.000000e+00 : bf16
    %161 = vector.broadcast %cst_60 : bf16 to vector<32x128xbf16>
    %162 = vector.shape_cast %20 : vector<1x128xi1> to vector<1x128xi1>
    %163 = vector.broadcast %162 : vector<1x128xi1> to vector<32x128xi1>
    %164 = arith.select %163, %160, %161 : vector<32x128xi1>, vector<32x128xbf16>
    %c32_61 = arith.constant 32 : index
    %c384_62 = arith.constant 384 : index
    %165 = vector.load %arg5[%c32_61, %c384_62] : memref<160x512xbf16, #tpu.memory_space<vmem>>, vector<32x128xbf16>
    tpu.vector_store %arg5[%c32_61, %c384_62], %164 {strides = array<i32>} : memref<160x512xbf16, #tpu.memory_space<vmem>>, vector<32x128xbf16>,
    %c64_63 = arith.constant 64 : index
    %c384_64 = arith.constant 384 : index
    %166 = vector.load %arg5[%c64_63, %c384_64] : memref<160x512xbf16, #tpu.memory_space<vmem>>, vector<32x128xbf16>
    tpu.vector_store %arg5[%c64_63, %c384_64], %149 {strides = array<i32>} : memref<160x512xbf16, #tpu.memory_space<vmem>>, vector<32x128xbf16>,
    %167 = vector.extract_strided_slice %149 {offsets = [0, 1], sizes = [32, 127], strides = [1, 1]} : vector<32x128xbf16> to vector<32x127xbf16>
    %168 = vector.extract_strided_slice %149 {offsets = [0, 0], sizes = [32, 1], strides = [1, 1]} : vector<32x128xbf16> to vector<32x1xbf16>
    %169 = tpu.concatenate %167, %168 in 1 : vector<32x127xbf16>, vector<32x1xbf16> -> vector<32x128xbf16>
    %cst_65 = arith.constant 0.000000e+00 : bf16
    %170 = vector.broadcast %cst_65 : bf16 to vector<32x128xbf16>
    %171 = vector.shape_cast %29 : vector<1x128xi1> to vector<1x128xi1>
    %172 = vector.broadcast %171 : vector<1x128xi1> to vector<32x128xi1>
    %173 = arith.select %172, %169, %170 : vector<32x128xi1>, vector<32x128xbf16>
    %c96_66 = arith.constant 96 : index
    %c384_67 = arith.constant 384 : index
    %174 = vector.load %arg5[%c96_66, %c384_67] : memref<160x512xbf16, #tpu.memory_space<vmem>>, vector<32x128xbf16>
    tpu.vector_store %arg5[%c96_66, %c384_67], %173 {strides = array<i32>} : memref<160x512xbf16, #tpu.memory_space<vmem>>, vector<32x128xbf16>,
    %175 = vector.extract_strided_slice %149 {offsets = [0, 2], sizes = [32, 126], strides = [1, 1]} : vector<32x128xbf16> to vector<32x126xbf16>
    %176 = vector.extract_strided_slice %149 {offsets = [0, 0], sizes = [32, 2], strides = [1, 1]} : vector<32x128xbf16> to vector<32x2xbf16>
    %177 = tpu.concatenate %175, %176 in 1 : vector<32x126xbf16>, vector<32x2xbf16> -> vector<32x128xbf16>
    %cst_68 = arith.constant 0.000000e+00 : bf16
    %178 = vector.broadcast %cst_68 : bf16 to vector<32x128xbf16>
    %179 = vector.shape_cast %38 : vector<1x128xi1> to vector<1x128xi1>
    %180 = vector.broadcast %179 : vector<1x128xi1> to vector<32x128xi1>
    %181 = arith.select %180, %177, %178 : vector<32x128xi1>, vector<32x128xbf16>
    %c128_69 = arith.constant 128 : index
    %c384_70 = arith.constant 384 : index
    %182 = vector.load %arg5[%c128_69, %c384_70] : memref<160x512xbf16, #tpu.memory_space<vmem>>, vector<32x128xbf16>
    tpu.vector_store %arg5[%c128_69, %c384_70], %181 {strides = array<i32>} : memref<160x512xbf16, #tpu.memory_space<vmem>>, vector<32x128xbf16>,
    %c0_71 = arith.constant 0 : index
    %c0_72 = arith.constant 0 : index
    %183 = vector.load %arg5[%c0_71, %c0_72] : memref<160x512xbf16, #tpu.memory_space<vmem>>, vector<160x512xbf16>
    %cst_73 = arith.constant dense<0.000000e+00> : vector<32x512xf32>
    %184 = tpu.matmul %0, %183, %cst_73 {dimension_numbers = #tpu.dot_dimension_numbers<[1], [0], [0], [1], [0, 0, 1, 1], [], []>} : vector<32x160xbf16>, vector<160x512xbf16>, vector<32x512xf32> -> vector<32x512xf32>
    %185 = vector.broadcast %1 : vector<32x1xf32> to vector<32x512xf32>
    %186 = arith.addf %184, %185 : vector<32x512xf32>
    %cst_74 = arith.constant 0.000000e+00 : f32
    %187 = vector.broadcast %cst_74 : f32 to vector<32x512xf32>
    %188 = arith.maximumf %186, %187 : vector<32x512xf32>
    %189 = arith.truncf %188 : vector<32x512xf32> to vector<32x512xbf16>
    %190 = vector.extract_strided_slice %189 {offsets = [0, 0], sizes = [32, 128], strides = [1, 1]} : vector<32x512xbf16> to vector<32x128xbf16>
    %191 = vector.extract_strided_slice %190 {offsets = [0, 126], sizes = [32, 2], strides = [1, 1]} : vector<32x128xbf16> to vector<32x2xbf16>
    %192 = vector.extract_strided_slice %190 {offsets = [0, 0], sizes = [32, 126], strides = [1, 1]} : vector<32x128xbf16> to vector<32x126xbf16>
    %193 = tpu.concatenate %191, %192 in 1 : vector<32x2xbf16>, vector<32x126xbf16> -> vector<32x128xbf16>
    %cst_75 = arith.constant 0.000000e+00 : bf16
    %194 = vector.broadcast %cst_75 : bf16 to vector<32x128xbf16>
    %195 = vector.shape_cast %11 : vector<1x128xi1> to vector<1x128xi1>
    %196 = vector.broadcast %195 : vector<1x128xi1> to vector<32x128xi1>
    %197 = arith.select %196, %193, %194 : vector<32x128xi1>, vector<32x128xbf16>
    %c0_76 = arith.constant 0 : index
    %c0_77 = arith.constant 0 : index
    %198 = vector.load %arg5[%c0_76, %c0_77] : memref<160x512xbf16, #tpu.memory_space<vmem>>, vector<32x128xbf16>
    tpu.vector_store %arg5[%c0_76, %c0_77], %197 {strides = array<i32>} : memref<160x512xbf16, #tpu.memory_space<vmem>>, vector<32x128xbf16>,
    %199 = vector.extract_strided_slice %190 {offsets = [0, 127], sizes = [32, 1], strides = [1, 1]} : vector<32x128xbf16> to vector<32x1xbf16>
    %200 = vector.extract_strided_slice %190 {offsets = [0, 0], sizes = [32, 127], strides = [1, 1]} : vector<32x128xbf16> to vector<32x127xbf16>
    %201 = tpu.concatenate %199, %200 in 1 : vector<32x1xbf16>, vector<32x127xbf16> -> vector<32x128xbf16>
    %cst_78 = arith.constant 0.000000e+00 : bf16
    %202 = vector.broadcast %cst_78 : bf16 to vector<32x128xbf16>
    %203 = vector.shape_cast %20 : vector<1x128xi1> to vector<1x128xi1>
    %204 = vector.broadcast %203 : vector<1x128xi1> to vector<32x128xi1>
    %205 = arith.select %204, %201, %202 : vector<32x128xi1>, vector<32x128xbf16>
    %c32_79 = arith.constant 32 : index
    %c0_80 = arith.constant 0 : index
    %206 = vector.load %arg5[%c32_79, %c0_80] : memref<160x512xbf16, #tpu.memory_space<vmem>>, vector<32x128xbf16>
    tpu.vector_store %arg5[%c32_79, %c0_80], %205 {strides = array<i32>} : memref<160x512xbf16, #tpu.memory_space<vmem>>, vector<32x128xbf16>,
    %c64_81 = arith.constant 64 : index
    %c0_82 = arith.constant 0 : index
    %207 = vector.load %arg5[%c64_81, %c0_82] : memref<160x512xbf16, #tpu.memory_space<vmem>>, vector<32x128xbf16>
    tpu.vector_store %arg5[%c64_81, %c0_82], %190 {strides = array<i32>} : memref<160x512xbf16, #tpu.memory_space<vmem>>, vector<32x128xbf16>,
    %208 = vector.extract_strided_slice %190 {offsets = [0, 1], sizes = [32, 127], strides = [1, 1]} : vector<32x128xbf16> to vector<32x127xbf16>
    %209 = vector.extract_strided_slice %190 {offsets = [0, 0], sizes = [32, 1], strides = [1, 1]} : vector<32x128xbf16> to vector<32x1xbf16>
    %210 = tpu.concatenate %208, %209 in 1 : vector<32x127xbf16>, vector<32x1xbf16> -> vector<32x128xbf16>
    %cst_83 = arith.constant 0.000000e+00 : bf16
    %211 = vector.broadcast %cst_83 : bf16 to vector<32x128xbf16>
    %212 = vector.shape_cast %29 : vector<1x128xi1> to vector<1x128xi1>
    %213 = vector.broadcast %212 : vector<1x128xi1> to vector<32x128xi1>
    %214 = arith.select %213, %210, %211 : vector<32x128xi1>, vector<32x128xbf16>
    %c96_84 = arith.constant 96 : index
    %c0_85 = arith.constant 0 : index
    %215 = vector.load %arg5[%c96_84, %c0_85] : memref<160x512xbf16, #tpu.memory_space<vmem>>, vector<32x128xbf16>
    tpu.vector_store %arg5[%c96_84, %c0_85], %214 {strides = array<i32>} : memref<160x512xbf16, #tpu.memory_space<vmem>>, vector<32x128xbf16>,
    %216 = vector.extract_strided_slice %190 {offsets = [0, 2], sizes = [32, 126], strides = [1, 1]} : vector<32x128xbf16> to vector<32x126xbf16>
    %217 = vector.extract_strided_slice %190 {offsets = [0, 0], sizes = [32, 2], strides = [1, 1]} : vector<32x128xbf16> to vector<32x2xbf16>
    %218 = tpu.concatenate %216, %217 in 1 : vector<32x126xbf16>, vector<32x2xbf16> -> vector<32x128xbf16>
    %cst_86 = arith.constant 0.000000e+00 : bf16
    %219 = vector.broadcast %cst_86 : bf16 to vector<32x128xbf16>
    %220 = vector.shape_cast %38 : vector<1x128xi1> to vector<1x128xi1>
    %221 = vector.broadcast %220 : vector<1x128xi1> to vector<32x128xi1>
    %222 = arith.select %221, %218, %219 : vector<32x128xi1>, vector<32x128xbf16>
    %c128_87 = arith.constant 128 : index
    %c0_88 = arith.constant 0 : index
    %223 = vector.load %arg5[%c128_87, %c0_88] : memref<160x512xbf16, #tpu.memory_space<vmem>>, vector<32x128xbf16>
    tpu.vector_store %arg5[%c128_87, %c0_88], %222 {strides = array<i32>} : memref<160x512xbf16, #tpu.memory_space<vmem>>, vector<32x128xbf16>,
    %224 = vector.extract_strided_slice %189 {offsets = [0, 128], sizes = [32, 128], strides = [1, 1]} : vector<32x512xbf16> to vector<32x128xbf16>
    %225 = vector.extract_strided_slice %224 {offsets = [0, 126], sizes = [32, 2], strides = [1, 1]} : vector<32x128xbf16> to vector<32x2xbf16>
    %226 = vector.extract_strided_slice %224 {offsets = [0, 0], sizes = [32, 126], strides = [1, 1]} : vector<32x128xbf16> to vector<32x126xbf16>
    %227 = tpu.concatenate %225, %226 in 1 : vector<32x2xbf16>, vector<32x126xbf16> -> vector<32x128xbf16>
    %cst_89 = arith.constant 0.000000e+00 : bf16
    %228 = vector.broadcast %cst_89 : bf16 to vector<32x128xbf16>
    %229 = vector.shape_cast %11 : vector<1x128xi1> to vector<1x128xi1>
    %230 = vector.broadcast %229 : vector<1x128xi1> to vector<32x128xi1>
    %231 = arith.select %230, %227, %228 : vector<32x128xi1>, vector<32x128xbf16>
    %c0_90 = arith.constant 0 : index
    %c128_91 = arith.constant 128 : index
    %232 = vector.load %arg5[%c0_90, %c128_91] : memref<160x512xbf16, #tpu.memory_space<vmem>>, vector<32x128xbf16>
    tpu.vector_store %arg5[%c0_90, %c128_91], %231 {strides = array<i32>} : memref<160x512xbf16, #tpu.memory_space<vmem>>, vector<32x128xbf16>,
    %233 = vector.extract_strided_slice %224 {offsets = [0, 127], sizes = [32, 1], strides = [1, 1]} : vector<32x128xbf16> to vector<32x1xbf16>
    %234 = vector.extract_strided_slice %224 {offsets = [0, 0], sizes = [32, 127], strides = [1, 1]} : vector<32x128xbf16> to vector<32x127xbf16>
    %235 = tpu.concatenate %233, %234 in 1 : vector<32x1xbf16>, vector<32x127xbf16> -> vector<32x128xbf16>
    %cst_92 = arith.constant 0.000000e+00 : bf16
    %236 = vector.broadcast %cst_92 : bf16 to vector<32x128xbf16>
    %237 = vector.shape_cast %20 : vector<1x128xi1> to vector<1x128xi1>
    %238 = vector.broadcast %237 : vector<1x128xi1> to vector<32x128xi1>
    %239 = arith.select %238, %235, %236 : vector<32x128xi1>, vector<32x128xbf16>
    %c32_93 = arith.constant 32 : index
    %c128_94 = arith.constant 128 : index
    %240 = vector.load %arg5[%c32_93, %c128_94] : memref<160x512xbf16, #tpu.memory_space<vmem>>, vector<32x128xbf16>
    tpu.vector_store %arg5[%c32_93, %c128_94], %239 {strides = array<i32>} : memref<160x512xbf16, #tpu.memory_space<vmem>>, vector<32x128xbf16>,
    %c64_95 = arith.constant 64 : index
    %c128_96 = arith.constant 128 : index
    %241 = vector.load %arg5[%c64_95, %c128_96] : memref<160x512xbf16, #tpu.memory_space<vmem>>, vector<32x128xbf16>
    tpu.vector_store %arg5[%c64_95, %c128_96], %224 {strides = array<i32>} : memref<160x512xbf16, #tpu.memory_space<vmem>>, vector<32x128xbf16>,
    %242 = vector.extract_strided_slice %224 {offsets = [0, 1], sizes = [32, 127], strides = [1, 1]} : vector<32x128xbf16> to vector<32x127xbf16>
    %243 = vector.extract_strided_slice %224 {offsets = [0, 0], sizes = [32, 1], strides = [1, 1]} : vector<32x128xbf16> to vector<32x1xbf16>
    %244 = tpu.concatenate %242, %243 in 1 : vector<32x127xbf16>, vector<32x1xbf16> -> vector<32x128xbf16>
    %cst_97 = arith.constant 0.000000e+00 : bf16
    %245 = vector.broadcast %cst_97 : bf16 to vector<32x128xbf16>
    %246 = vector.shape_cast %29 : vector<1x128xi1> to vector<1x128xi1>
    %247 = vector.broadcast %246 : vector<1x128xi1> to vector<32x128xi1>
    %248 = arith.select %247, %244, %245 : vector<32x128xi1>, vector<32x128xbf16>
    %c96_98 = arith.constant 96 : index
    %c128_99 = arith.constant 128 : index
    %249 = vector.load %arg5[%c96_98, %c128_99] : memref<160x512xbf16, #tpu.memory_space<vmem>>, vector<32x128xbf16>
    tpu.vector_store %arg5[%c96_98, %c128_99], %248 {strides = array<i32>} : memref<160x512xbf16, #tpu.memory_space<vmem>>, vector<32x128xbf16>,
    %250 = vector.extract_strided_slice %224 {offsets = [0, 2], sizes = [32, 126], strides = [1, 1]} : vector<32x128xbf16> to vector<32x126xbf16>
    %251 = vector.extract_strided_slice %224 {offsets = [0, 0], sizes = [32, 2], strides = [1, 1]} : vector<32x128xbf16> to vector<32x2xbf16>
    %252 = tpu.concatenate %250, %251 in 1 : vector<32x126xbf16>, vector<32x2xbf16> -> vector<32x128xbf16>
    %cst_100 = arith.constant 0.000000e+00 : bf16
    %253 = vector.broadcast %cst_100 : bf16 to vector<32x128xbf16>
    %254 = vector.shape_cast %38 : vector<1x128xi1> to vector<1x128xi1>
    %255 = vector.broadcast %254 : vector<1x128xi1> to vector<32x128xi1>
    %256 = arith.select %255, %252, %253 : vector<32x128xi1>, vector<32x128xbf16>
    %c128_101 = arith.constant 128 : index
    %c128_102 = arith.constant 128 : index
    %257 = vector.load %arg5[%c128_101, %c128_102] : memref<160x512xbf16, #tpu.memory_space<vmem>>, vector<32x128xbf16>
    tpu.vector_store %arg5[%c128_101, %c128_102], %256 {strides = array<i32>} : memref<160x512xbf16, #tpu.memory_space<vmem>>, vector<32x128xbf16>,
    %258 = vector.extract_strided_slice %189 {offsets = [0, 256], sizes = [32, 128], strides = [1, 1]} : vector<32x512xbf16> to vector<32x128xbf16>
    %259 = vector.extract_strided_slice %258 {offsets = [0, 126], sizes = [32, 2], strides = [1, 1]} : vector<32x128xbf16> to vector<32x2xbf16>
    %260 = vector.extract_strided_slice %258 {offsets = [0, 0], sizes = [32, 126], strides = [1, 1]} : vector<32x128xbf16> to vector<32x126xbf16>
    %261 = tpu.concatenate %259, %260 in 1 : vector<32x2xbf16>, vector<32x126xbf16> -> vector<32x128xbf16>
    %cst_103 = arith.constant 0.000000e+00 : bf16
    %262 = vector.broadcast %cst_103 : bf16 to vector<32x128xbf16>
    %263 = vector.shape_cast %11 : vector<1x128xi1> to vector<1x128xi1>
    %264 = vector.broadcast %263 : vector<1x128xi1> to vector<32x128xi1>
    %265 = arith.select %264, %261, %262 : vector<32x128xi1>, vector<32x128xbf16>
    %c0_104 = arith.constant 0 : index
    %c256_105 = arith.constant 256 : index
    %266 = vector.load %arg5[%c0_104, %c256_105] : memref<160x512xbf16, #tpu.memory_space<vmem>>, vector<32x128xbf16>
    tpu.vector_store %arg5[%c0_104, %c256_105], %265 {strides = array<i32>} : memref<160x512xbf16, #tpu.memory_space<vmem>>, vector<32x128xbf16>,
    %267 = vector.extract_strided_slice %258 {offsets = [0, 127], sizes = [32, 1], strides = [1, 1]} : vector<32x128xbf16> to vector<32x1xbf16>
    %268 = vector.extract_strided_slice %258 {offsets = [0, 0], sizes = [32, 127], strides = [1, 1]} : vector<32x128xbf16> to vector<32x127xbf16>
    %269 = tpu.concatenate %267, %268 in 1 : vector<32x1xbf16>, vector<32x127xbf16> -> vector<32x128xbf16>
    %cst_106 = arith.constant 0.000000e+00 : bf16
    %270 = vector.broadcast %cst_106 : bf16 to vector<32x128xbf16>
    %271 = vector.shape_cast %20 : vector<1x128xi1> to vector<1x128xi1>
    %272 = vector.broadcast %271 : vector<1x128xi1> to vector<32x128xi1>
    %273 = arith.select %272, %269, %270 : vector<32x128xi1>, vector<32x128xbf16>
    %c32_107 = arith.constant 32 : index
    %c256_108 = arith.constant 256 : index
    %274 = vector.load %arg5[%c32_107, %c256_108] : memref<160x512xbf16, #tpu.memory_space<vmem>>, vector<32x128xbf16>
    tpu.vector_store %arg5[%c32_107, %c256_108], %273 {strides = array<i32>} : memref<160x512xbf16, #tpu.memory_space<vmem>>, vector<32x128xbf16>,
    %c64_109 = arith.constant 64 : index
    %c256_110 = arith.constant 256 : index
    %275 = vector.load %arg5[%c64_109, %c256_110] : memref<160x512xbf16, #tpu.memory_space<vmem>>, vector<32x128xbf16>
    tpu.vector_store %arg5[%c64_109, %c256_110], %258 {strides = array<i32>} : memref<160x512xbf16, #tpu.memory_space<vmem>>, vector<32x128xbf16>,
    %276 = vector.extract_strided_slice %258 {offsets = [0, 1], sizes = [32, 127], strides = [1, 1]} : vector<32x128xbf16> to vector<32x127xbf16>
    %277 = vector.extract_strided_slice %258 {offsets = [0, 0], sizes = [32, 1], strides = [1, 1]} : vector<32x128xbf16> to vector<32x1xbf16>
    %278 = tpu.concatenate %276, %277 in 1 : vector<32x127xbf16>, vector<32x1xbf16> -> vector<32x128xbf16>
    %cst_111 = arith.constant 0.000000e+00 : bf16
    %279 = vector.broadcast %cst_111 : bf16 to vector<32x128xbf16>
    %280 = vector.shape_cast %29 : vector<1x128xi1> to vector<1x128xi1>
    %281 = vector.broadcast %280 : vector<1x128xi1> to vector<32x128xi1>
    %282 = arith.select %281, %278, %279 : vector<32x128xi1>, vector<32x128xbf16>
    %c96_112 = arith.constant 96 : index
    %c256_113 = arith.constant 256 : index
    %283 = vector.load %arg5[%c96_112, %c256_113] : memref<160x512xbf16, #tpu.memory_space<vmem>>, vector<32x128xbf16>
    tpu.vector_store %arg5[%c96_112, %c256_113], %282 {strides = array<i32>} : memref<160x512xbf16, #tpu.memory_space<vmem>>, vector<32x128xbf16>,
    %284 = vector.extract_strided_slice %258 {offsets = [0, 2], sizes = [32, 126], strides = [1, 1]} : vector<32x128xbf16> to vector<32x126xbf16>
    %285 = vector.extract_strided_slice %258 {offsets = [0, 0], sizes = [32, 2], strides = [1, 1]} : vector<32x128xbf16> to vector<32x2xbf16>
    %286 = tpu.concatenate %284, %285 in 1 : vector<32x126xbf16>, vector<32x2xbf16> -> vector<32x128xbf16>
    %cst_114 = arith.constant 0.000000e+00 : bf16
    %287 = vector.broadcast %cst_114 : bf16 to vector<32x128xbf16>
    %288 = vector.shape_cast %38 : vector<1x128xi1> to vector<1x128xi1>
    %289 = vector.broadcast %288 : vector<1x128xi1> to vector<32x128xi1>
    %290 = arith.select %289, %286, %287 : vector<32x128xi1>, vector<32x128xbf16>
    %c128_115 = arith.constant 128 : index
    %c256_116 = arith.constant 256 : index
    %291 = vector.load %arg5[%c128_115, %c256_116] : memref<160x512xbf16, #tpu.memory_space<vmem>>, vector<32x128xbf16>
    tpu.vector_store %arg5[%c128_115, %c256_116], %290 {strides = array<i32>} : memref<160x512xbf16, #tpu.memory_space<vmem>>, vector<32x128xbf16>,
    %292 = vector.extract_strided_slice %189 {offsets = [0, 384], sizes = [32, 128], strides = [1, 1]} : vector<32x512xbf16> to vector<32x128xbf16>
    %293 = vector.extract_strided_slice %292 {offsets = [0, 126], sizes = [32, 2], strides = [1, 1]} : vector<32x128xbf16> to vector<32x2xbf16>
    %294 = vector.extract_strided_slice %292 {offsets = [0, 0], sizes = [32, 126], strides = [1, 1]} : vector<32x128xbf16> to vector<32x126xbf16>
    %295 = tpu.concatenate %293, %294 in 1 : vector<32x2xbf16>, vector<32x126xbf16> -> vector<32x128xbf16>
    %cst_117 = arith.constant 0.000000e+00 : bf16
    %296 = vector.broadcast %cst_117 : bf16 to vector<32x128xbf16>
    %297 = vector.shape_cast %11 : vector<1x128xi1> to vector<1x128xi1>
    %298 = vector.broadcast %297 : vector<1x128xi1> to vector<32x128xi1>
    %299 = arith.select %298, %295, %296 : vector<32x128xi1>, vector<32x128xbf16>
    %c0_118 = arith.constant 0 : index
    %c384_119 = arith.constant 384 : index
    %300 = vector.load %arg5[%c0_118, %c384_119] : memref<160x512xbf16, #tpu.memory_space<vmem>>, vector<32x128xbf16>
    tpu.vector_store %arg5[%c0_118, %c384_119], %299 {strides = array<i32>} : memref<160x512xbf16, #tpu.memory_space<vmem>>, vector<32x128xbf16>,
    %301 = vector.extract_strided_slice %292 {offsets = [0, 127], sizes = [32, 1], strides = [1, 1]} : vector<32x128xbf16> to vector<32x1xbf16>
    %302 = vector.extract_strided_slice %292 {offsets = [0, 0], sizes = [32, 127], strides = [1, 1]} : vector<32x128xbf16> to vector<32x127xbf16>
    %303 = tpu.concatenate %301, %302 in 1 : vector<32x1xbf16>, vector<32x127xbf16> -> vector<32x128xbf16>
    %cst_120 = arith.constant 0.000000e+00 : bf16
    %304 = vector.broadcast %cst_120 : bf16 to vector<32x128xbf16>
    %305 = vector.shape_cast %20 : vector<1x128xi1> to vector<1x128xi1>
    %306 = vector.broadcast %305 : vector<1x128xi1> to vector<32x128xi1>
    %307 = arith.select %306, %303, %304 : vector<32x128xi1>, vector<32x128xbf16>
    %c32_121 = arith.constant 32 : index
    %c384_122 = arith.constant 384 : index
    %308 = vector.load %arg5[%c32_121, %c384_122] : memref<160x512xbf16, #tpu.memory_space<vmem>>, vector<32x128xbf16>
    tpu.vector_store %arg5[%c32_121, %c384_122], %307 {strides = array<i32>} : memref<160x512xbf16, #tpu.memory_space<vmem>>, vector<32x128xbf16>,
    %c64_123 = arith.constant 64 : index
    %c384_124 = arith.constant 384 : index
    %309 = vector.load %arg5[%c64_123, %c384_124] : memref<160x512xbf16, #tpu.memory_space<vmem>>, vector<32x128xbf16>
    tpu.vector_store %arg5[%c64_123, %c384_124], %292 {strides = array<i32>} : memref<160x512xbf16, #tpu.memory_space<vmem>>, vector<32x128xbf16>,
    %310 = vector.extract_strided_slice %292 {offsets = [0, 1], sizes = [32, 127], strides = [1, 1]} : vector<32x128xbf16> to vector<32x127xbf16>
    %311 = vector.extract_strided_slice %292 {offsets = [0, 0], sizes = [32, 1], strides = [1, 1]} : vector<32x128xbf16> to vector<32x1xbf16>
    %312 = tpu.concatenate %310, %311 in 1 : vector<32x127xbf16>, vector<32x1xbf16> -> vector<32x128xbf16>
    %cst_125 = arith.constant 0.000000e+00 : bf16
    %313 = vector.broadcast %cst_125 : bf16 to vector<32x128xbf16>
    %314 = vector.shape_cast %29 : vector<1x128xi1> to vector<1x128xi1>
    %315 = vector.broadcast %314 : vector<1x128xi1> to vector<32x128xi1>
    %316 = arith.select %315, %312, %313 : vector<32x128xi1>, vector<32x128xbf16>
    %c96_126 = arith.constant 96 : index
    %c384_127 = arith.constant 384 : index
    %317 = vector.load %arg5[%c96_126, %c384_127] : memref<160x512xbf16, #tpu.memory_space<vmem>>, vector<32x128xbf16>
    tpu.vector_store %arg5[%c96_126, %c384_127], %316 {strides = array<i32>} : memref<160x512xbf16, #tpu.memory_space<vmem>>, vector<32x128xbf16>,
    %318 = vector.extract_strided_slice %292 {offsets = [0, 2], sizes = [32, 126], strides = [1, 1]} : vector<32x128xbf16> to vector<32x126xbf16>
    %319 = vector.extract_strided_slice %292 {offsets = [0, 0], sizes = [32, 2], strides = [1, 1]} : vector<32x128xbf16> to vector<32x2xbf16>
    %320 = tpu.concatenate %318, %319 in 1 : vector<32x126xbf16>, vector<32x2xbf16> -> vector<32x128xbf16>
    %cst_128 = arith.constant 0.000000e+00 : bf16
    %321 = vector.broadcast %cst_128 : bf16 to vector<32x128xbf16>
    %322 = vector.shape_cast %38 : vector<1x128xi1> to vector<1x128xi1>
    %323 = vector.broadcast %322 : vector<1x128xi1> to vector<32x128xi1>
    %324 = arith.select %323, %320, %321 : vector<32x128xi1>, vector<32x128xbf16>
    %c128_129 = arith.constant 128 : index
    %c384_130 = arith.constant 384 : index
    %325 = vector.load %arg5[%c128_129, %c384_130] : memref<160x512xbf16, #tpu.memory_space<vmem>>, vector<32x128xbf16>
    tpu.vector_store %arg5[%c128_129, %c384_130], %324 {strides = array<i32>} : memref<160x512xbf16, #tpu.memory_space<vmem>>, vector<32x128xbf16>,
    %c0_131 = arith.constant 0 : index
    %c0_132 = arith.constant 0 : index
    %326 = vector.load %arg5[%c0_131, %c0_132] : memref<160x512xbf16, #tpu.memory_space<vmem>>, vector<160x512xbf16>
    %cst_133 = arith.constant dense<0.000000e+00> : vector<32x512xf32>
    %327 = tpu.matmul %0, %326, %cst_133 {dimension_numbers = #tpu.dot_dimension_numbers<[1], [0], [0], [1], [0, 0, 1, 1], [], []>} : vector<32x160xbf16>, vector<160x512xbf16>, vector<32x512xf32> -> vector<32x512xf32>
    %328 = vector.extract_strided_slice %327 {offsets = [0, 0], sizes = [32, 128], strides = [1, 1]} : vector<32x512xf32> to vector<32x128xf32>
    %329 = vector.broadcast %1 : vector<32x1xf32> to vector<32x128xf32>
    %330 = arith.addf %328, %329 : vector<32x128xf32>
    %c0_134 = arith.constant 0 : index
    %c0_135 = arith.constant 0 : index
    %c0_136 = arith.constant 0 : index
    %331 = vector.load %arg1[%c0_134, %c0_135, %c0_136] : memref<4x32x128xf32, #tpu.memory_space<vmem>>, vector<1x32x128xf32>
    %332 = vector.shape_cast %331 : vector<1x32x128xf32> to vector<32x128xf32>
    %333 = arith.addf %330, %332 : vector<32x128xf32>
    %c0_137 = arith.constant 0 : index
    %c0_138 = arith.constant 0 : index
    %c0_139 = arith.constant 0 : index
    %334 = vector.load %arg4[%c0_137, %c0_138, %c0_139] : memref<4x32x128xf32, #tpu.memory_space<vmem>>, vector<1x32x128xf32>
    %335 = vector.shape_cast %334 : vector<1x32x128xf32> to vector<32x128xf32>
    %336 = vector.shape_cast %333 : vector<32x128xf32> to vector<1x32x128xf32>
    tpu.vector_store %arg4[%c0_137, %c0_138, %c0_139], %336 {strides = array<i32>} : memref<4x32x128xf32, #tpu.memory_space<vmem>>, vector<1x32x128xf32>,
    %337 = vector.extract_strided_slice %327 {offsets = [0, 128], sizes = [32, 128], strides = [1, 1]} : vector<32x512xf32> to vector<32x128xf32>
    %338 = vector.broadcast %1 : vector<32x1xf32> to vector<32x128xf32>
    %339 = arith.addf %337, %338 : vector<32x128xf32>
    %c1_140 = arith.constant 1 : index
    %c0_141 = arith.constant 0 : index
    %c0_142 = arith.constant 0 : index
    %340 = vector.load %arg1[%c1_140, %c0_141, %c0_142] : memref<4x32x128xf32, #tpu.memory_space<vmem>>, vector<1x32x128xf32>
    %341 = vector.shape_cast %340 : vector<1x32x128xf32> to vector<32x128xf32>
    %342 = arith.addf %339, %341 : vector<32x128xf32>
    %c1_143 = arith.constant 1 : index
    %c0_144 = arith.constant 0 : index
    %c0_145 = arith.constant 0 : index
    %343 = vector.load %arg4[%c1_143, %c0_144, %c0_145] : memref<4x32x128xf32, #tpu.memory_space<vmem>>, vector<1x32x128xf32>
    %344 = vector.shape_cast %343 : vector<1x32x128xf32> to vector<32x128xf32>
    %345 = vector.shape_cast %342 : vector<32x128xf32> to vector<1x32x128xf32>
    tpu.vector_store %arg4[%c1_143, %c0_144, %c0_145], %345 {strides = array<i32>} : memref<4x32x128xf32, #tpu.memory_space<vmem>>, vector<1x32x128xf32>,
    %346 = vector.extract_strided_slice %327 {offsets = [0, 256], sizes = [32, 128], strides = [1, 1]} : vector<32x512xf32> to vector<32x128xf32>
    %347 = vector.broadcast %1 : vector<32x1xf32> to vector<32x128xf32>
    %348 = arith.addf %346, %347 : vector<32x128xf32>
    %c2_146 = arith.constant 2 : index
    %c0_147 = arith.constant 0 : index
    %c0_148 = arith.constant 0 : index
    %349 = vector.load %arg1[%c2_146, %c0_147, %c0_148] : memref<4x32x128xf32, #tpu.memory_space<vmem>>, vector<1x32x128xf32>
    %350 = vector.shape_cast %349 : vector<1x32x128xf32> to vector<32x128xf32>
    %351 = arith.addf %348, %350 : vector<32x128xf32>
    %c2_149 = arith.constant 2 : index
    %c0_150 = arith.constant 0 : index
    %c0_151 = arith.constant 0 : index
    %352 = vector.load %arg4[%c2_149, %c0_150, %c0_151] : memref<4x32x128xf32, #tpu.memory_space<vmem>>, vector<1x32x128xf32>
    %353 = vector.shape_cast %352 : vector<1x32x128xf32> to vector<32x128xf32>
    %354 = vector.shape_cast %351 : vector<32x128xf32> to vector<1x32x128xf32>
    tpu.vector_store %arg4[%c2_149, %c0_150, %c0_151], %354 {strides = array<i32>} : memref<4x32x128xf32, #tpu.memory_space<vmem>>, vector<1x32x128xf32>,
    %355 = vector.extract_strided_slice %327 {offsets = [0, 384], sizes = [32, 128], strides = [1, 1]} : vector<32x512xf32> to vector<32x128xf32>
    %356 = vector.broadcast %1 : vector<32x1xf32> to vector<32x128xf32>
    %357 = arith.addf %355, %356 : vector<32x128xf32>
    %c3_152 = arith.constant 3 : index
    %c0_153 = arith.constant 0 : index
    %c0_154 = arith.constant 0 : index
    %358 = vector.load %arg1[%c3_152, %c0_153, %c0_154] : memref<4x32x128xf32, #tpu.memory_space<vmem>>, vector<1x32x128xf32>
    %359 = vector.shape_cast %358 : vector<1x32x128xf32> to vector<32x128xf32>
    %360 = arith.addf %357, %359 : vector<32x128xf32>
    %c3_155 = arith.constant 3 : index
    %c0_156 = arith.constant 0 : index
    %c0_157 = arith.constant 0 : index
    %361 = vector.load %arg4[%c3_155, %c0_156, %c0_157] : memref<4x32x128xf32, #tpu.memory_space<vmem>>, vector<1x32x128xf32>
    %362 = vector.shape_cast %361 : vector<1x32x128xf32> to vector<32x128xf32>
    %363 = vector.shape_cast %360 : vector<32x128xf32> to vector<1x32x128xf32>
    tpu.vector_store %arg4[%c3_155, %c0_156, %c0_157], %363 {strides = array<i32>} : memref<4x32x128xf32, #tpu.memory_space<vmem>>, vector<1x32x128xf32>,
    return
  }
  func.func @transform_0(%arg0: i32) -> (i32, i32, i32) {
    %c0_i32 = arith.constant 0 : i32
    %c0_i32_0 = arith.constant 0 : i32
    %c0_i32_1 = arith.constant 0 : i32
    return %arg0, %c0_i32, %c0_i32_0 : i32, i32, i32
  }
  func.func @transform_1(%arg0: i32) -> (i32, i32) {
    %c0_i32 = arith.constant 0 : i32
    %c0_i32_0 = arith.constant 0 : i32
    %c0_i32_1 = arith.constant 0 : i32
    return %c0_i32, %c0_i32_0 : i32, i32
  }
  func.func @transform_2(%arg0: i32) -> (i32, i32) {
    %c0_i32 = arith.constant 0 : i32
    %c0_i32_0 = arith.constant 0 : i32
    %c0_i32_1 = arith.constant 0 : i32
    return %c0_i32, %c0_i32_0 : i32, i32
  }
  func.func @transform_3(%arg0: i32) -> (i32, i32, i32) {
    %c0_i32 = arith.constant 0 : i32
    %c0_i32_0 = arith.constant 0 : i32
    %c0_i32_1 = arith.constant 0 : i32
    return %arg0, %c0_i32, %c0_i32_0 : i32, i32, i32
  }
}

</mosaic_0001>

<bundles_post_ra>
// kernel: tpu_custom_call.1
= control target key start
LH: loop header
LB: loop body
LE: loop exit
PB: predicated region body
PF: predicated region fallthrough
CT: control target
= control target key end

     0   :  { %8 = vsyncpa [#allocation4], 0  ;;  %s2203_s0 = inlined_call_operand.hbm [shape: f32[8,32,128], index: 0, kind: input, shape index: {}]   ;;  %s2204_s1 = inlined_call_operand.vmem [shape: bf16[32,160], index: 1, kind: input, shape index: {}]   ;;  %s2205_s2 = inlined_call_operand.vmem [shape: f32[32,1], index: 2, kind: input, shape index: {}]   ;;  %s2206_s3 = inlined_call_operand.hbm [shape: f32[8,32,128], index: 3, kind: output, shape index: {}]  }
   0x1   :  { %10 = vsyncpa [#allocation4 + $0x1], 0 }
   0x2   :  { %11 = vsyncpa [#allocation5], 0 }
   0x3   :  { %13 = vsyncpa [#allocation5 + $0x1], 0  ;;  %s1508_s12 = smov 0   ;;  %s1510_s13 = smov 0  }
   0x4   :  { %s1512_s14 = smov 0   ;;  %s1514_s15 = smov 0  }
   0x5 LB: > { %s1529_s16 = sadd.s32 4294967295, %s1475_s15   ;;  %s1216_s17 = sadd.s32 4294967294, %s1475_s15   ;;  %s1475_s15 = sphi %s1514_s15, %s2227_s15   ;;  %s1471_s14 = sphi %s1512_s14, %s2226_s14   ;;  %s1467_s13 = sphi %s1510_s13, %s2225_s13   ;;  %s1463_s12 = sphi %s1508_s12, %s2224_s12  }
   0x6   : > { %s1533_s18 = sadd.s32 1, %s1475_s15   ;;  %s26_s19 = sadd.s32 1, %s1471_s14 }
   0x7   : > { %s23_s20 = ssub.s32 %s1475_s15, %s1533_s18  ;;  %p33_p0 = scmp.ne.s32.totalorder %s1471_s14, %s1467_s13 }
   0x8   : > { %p24_p1 = scmp.eq.s32.totalorder %s23_s20, 0  ;;  %p34_p2 = scmp.eq.s32.totalorder %s1475_s15, 0 }
   0x9   : > { %p39_p3 = scmp.ne.s32.totalorder %s1467_s13, %s1463_s12  ;;  %p40_p4 = scmp.eq.s32.totalorder %s1529_s16, 0 }
   0xa   : > { %s1545_s21 = scalar_select %p24_p1, %s1471_s14, %s26_s19  }
   0xb   : > { %p1547_p5 = por %p34_p2, %p33_p0  ;;  %p1551_p6 = por %p40_p4, %p39_p3 }
   0xc   : > { %p105_p7 = scmp.eq.s32.totalorder %s1529_s16, 1  ;;  %p111_p8 = scmp.eq.s32.totalorder %s1216_s17, 1 }
   0xd   : > { %p1328_p10 = scmp.lt.s32.totalorder %s1475_s15, 2  ;;  %s137_s26 = sand.u32 1, %s1471_s14  }
   0xe   : > { %p1558_p11 = por %p105_p7, %p33_p0  ;;  %p1562_p12 = por %p111_p8, %p39_p3 }
   0xf   : > { %s1281_s27 = sshll.u32 %s1475_s15, 11  ;;  %s1219_s28 = sshll.u32 %s137_s26, 7 }
  0x10   : > { %s2210_s24 = scalar_select %p1558_p11, 1, 0 }
  0x11   : > { %s2211_s25 = scalar_select %p1562_p12, 1, 0 }
  0x12   : > { %s1571_s4 = scalar_lea.hbm %s2203_s0, %s1281_s27  ;;  %s141_s5 = scalar_lea.vmem [#allocation3], %s1219_s28 }
  0x13   : > { %s149_s6 = sshll.u32 %s141_s5, 4  ;;  %p1575_p13 = pnand %p1328_p10, %p1547_p5  ;;  %s1579_s6 = int_to_ptr.vmem [resolvable:$true] %s149_s6 }
  0x14   : > { %s1581_s8 = scalar_lea.sflag [#allocation4], %s137_s26  ;;  %s1379_s9 = scalar_lea.hbm %s1571_s4, 2048 }
  0x15   : > { %p1380_p0 = scmp.ne.s32.totalorder %s1571_s4, %s1379_s9  ;;  %p1381_p1 = pneg %p1575_p13 }
  0x16   : > { %s1384_s17 = scalar_lea.hbm %s2203_s0, 4096  ;;  %p1385_p4 = scmp.lt.u32.totalorder %s1571_s4, %s2203_s0 }
  0x17   : > { %p1382_p2 = pnand %p1381_p1, %p1380_p0  ;;  %p1386_p5 = scmp.lt.u32.totalorder %s1384_s17, %s1379_s9 }
  0x18   : > { %p1388_p8 = scmp.lt.u32.totalorder %s1379_s9, %s1571_s4 }
  0x19   : > { %p1383_p3 = pneg %p1382_p2  ;;  %p1387_p7 = por %p1386_p5, %p1385_p4 }
  0x1b   : > { %p1389_p10 = por %p1388_p8, %p1387_p7 }
  0x1d   : > { %p1390_p9 = pnand %p1389_p10, %p1383_p3 }
  0x1f   : > { %1393 = shalt.err (!%p1390_p9)
}
  0x20   : > { %s1394_s22 = scalar_lea.vmem %s1579_s6, 2048  ;;  %s1477_s26 = smov [#allocation3]  }
  0x21   : > { %p1395_p0 = scmp.ne.s32.totalorder %s1579_s6, %s1394_s22  ;;  %s1399_s27 = sshll.u32 %s1477_s26, 4  ;;  %s1400_s27 = int_to_ptr.vmem [resolvable:$false] %s1399_s27 }
  0x22   : > { %s1401_s28 = scalar_lea.vmem %s1400_s27, 4096  ;;  %p1402_p11 = scmp.lt.s32.totalorder %s1579_s6, %s1400_s27 }
  0x23   : > { %p1397_p2 = pnand %p1395_p0, %p1381_p1  ;;  %p1403_p4 = scmp.lt.s32.totalorder %s1401_s28, %s1394_s22 }
  0x25   : > { %p1398_p12 = pneg %p1397_p2  ;;  %p1404_p5 = por %p1403_p4, %p1402_p11 }
  0x27   : > { %p1405_p7 = pnand %p1404_p5, %p1398_p12 }
  0x29   : > { %1408 = shalt.err (!%p1405_p7)
}
  0x2a   : > { %s1478_s29 = smov 128   ;;  %s1479_s30 = smov 8  }
  0x2b   : > { %1323 = dma.hbm_to_vmem [thread:$0]  (!%p1575_p13), %s1571_s4, 2048, %s1579_s6, %s1581_s8, %s1478_s29, %s1478_s29, %s1479_s30  }
  0x2c   : > { %p1223_p9 = scmp.ge.s32.totalorder %s1475_s15, 1  ;;  %p157_p1 = scmp.lt.s32.totalorder %s1475_s15, 3 }
  0x2e   : > { %p158_p3 = pnand %p1223_p9, %p157_p1 }
  0x2f   : > { %s1612_s5 = sand.u32 (!%p158_p3), 1, %s1467_s13  }
  0x30   : > { %161 = sbr.rel (%p158_p3) target bundleno = 877 (0x36d), region = 32  ;;  %s1224_s9 = sshll.u32 (!%p158_p3), %s1612_s5, 7 }
  0x31   : > { %s164_s10 = scalar_lea.sflag (!%p158_p3), [#allocation4], %s1612_s5  ;;  %s1618_s11 = scalar_lea.vmem (!%p158_p3), [#allocation3], %s1224_s9 }
  0x37   : > { %1454 = dma.done.wait (%p1551_p6), %s164_s10, 2048  }
  0x38   : > { %1456 = vsyncadd (%p1551_p6), %s164_s10, 4294965248  ;;  %v1480_v0 = vmov 0   ;;  %v1627_v1 = vld [vmem:[%s1618_s11 + $0x40] sm:$0xff]  ;;  %v1630_v2 = vld [vmem:[%s1618_s11 + $0x48] sm:$0xff]  ;;  %s1481_s23 = smov 2   ;;  %s1482_s4 = smov 1   ;;  %v203_v30 = vlaneseq }
  0x39   : > { %1372 = vset.pattern.permute.xlu1 %v1480_v0  ;;  %1371 = vset.pattern.permute.xlu0 %v1480_v0  ;;  %v1633_v3 = vld [vmem:[%s1618_s11] sm:$0xff]  ;;  %v1637_v4 = vpack.c.bf16 %v1630_v2, %v1627_v1  ;;  %v1640_v5 = vld [vmem:[%s1618_s11 + $0x8] sm:$0xff]  ;;  %v1671_v13 = vld [vmem:[%s1618_s11 + $0x30] sm:$0xff]  ;;  %s1483_s6 = smov 127   ;;  %vm570_vm0 = vcmask 261120   ;;  %s1484_s17 = smov 126  }
  0x3a   : > { %v1643_v6 = vld [vmem:[%s1618_s11 + $0x60] sm:$0xff]  ;;  %v1646_v7 = vld [vmem:[%s1618_s11 + $0x68] sm:$0xff]  ;;  %v1650_v8 = vpack.c.bf16 %v1640_v5, %v1633_v3  ;;  %v1674_v14 = vld [vmem:[%s1618_s11 + $0x38] sm:$0xff]  ;;  %v204_v31 = vand.u32 127, %v203_v30  ;;  %v242_v33 = vshrl.u32 %v203_v30, 7  ;;  %s1129_s22 = scalar_lea.sflag [#allocation5], %s1612_s5 }
  0x3b   : > { %v1653_v9 = vld [vmem:[%s1618_s11 + $0x20] sm:$0xff]  ;;  %v1656_v10 = vld [vmem:[%s1618_s11 + $0x28] sm:$0xff]  ;;  %383 = vrot.lane.b32.xlu1 %v1637_v4, %s1481_s23  ;;  %v1662_v11 = vpack.c.bf16 %v1646_v7, %v1643_v6  ;;  %v1677_v15 = vld [vmem:[%s1618_s11 + $0x10] sm:$0xff]  ;;  %v1686_v17 = vpack.c.bf16 %v1674_v14, %v1671_v13  ;;  %p2221_p11 = scmp.ne.s32.totalorder %s2210_s24, 0  ;;  %s1485_s27 = smov [#allocation6]  }
  0x3c   : > { %229 = vrot.lane.b32.xlu0 %v1650_v8, %s1481_s23  ;;  %v1668_v12 = vpack.c.bf16 %v1656_v10, %v1653_v9  ;;  %v1680_v16 = vld [vmem:[%s1618_s11 + $0x18] sm:$0xff]  ;;  %v1695_v19 = vld [vmem:[%s1618_s11 + $0x70] sm:$0xff]  ;;  %v1757_v25 = vld [vmem:[%s2204_s1 + $0x4] ss:$8 sps:$4 sm:$0xff]   ;;  %v205_v32 = vadd.s32 4294967294, %v204_v31  ;;  %v1791_v34 = vsub.s32 0, %v242_v33 }
  0x3d   : > { %v1692_v18 = vpack.c.bf16 %v1680_v16, %v1677_v15  ;;  %v1698_v20 = vld [vmem:[%s1618_s11 + $0x78] sm:$0xff]  ;;  %v1701_v21 = vld [vmem:[%s1618_s11 + $0x50] sm:$0xff]  ;;  %1242 = vmatprep.mubr.msk.bf16.mxu0 %vm570_vm0, %v1757_v25  ;;  %1244 = vmatprep.mubr.msk.bf16.mxu1 %vm570_vm0, %v1757_v25  ;;  %v200_v26 = vld [vmem:[%s2205_s2 + $0x8] sm:$0xff]  ;;  %v209_v36 = vadd.s32 4294967295, %v204_v31  ;;  %v213_v57 = vadd.s32 1, %v204_v31  ;;  %s1413_s28 = sshll.u32 %s1485_s27, 4  ;;  %s1414_s28 = int_to_ptr.vmem [resolvable:$false] %s1413_s28 }
  0x3e   : > { %v1704_v22 = vld [vmem:[%s1618_s11 + $0x58] sm:$0xff]  ;;  %v1710_v23 = vpack.c.bf16 %v1698_v20, %v1695_v19  ;;  %v199_v27 = vld [vmem:[%s2205_s2] sm:$0xff]  ;;  %v201_v28 = vld [vmem:[%s2205_s2 + $0x10] sm:$0xff]  ;;  %vm206_vm1 = vcmp.ge.s32.totalorder %v205_v32, 0  ;;  %s1415_s29 = scalar_lea.vmem %s1414_s28, 4096 }
  0x3f   : > { %442 = vrot.lane.b32.xlu1 %v1662_v11, %s1481_s23  ;;  %v1716_v24 = vpack.c.bf16 %v1704_v22, %v1701_v21  ;;  %v202_v29 = vld [vmem:[%s2205_s2 + $0x18] sm:$0xff]  ;;  %vm239_vm2 = vmpackc.low %vm206_vm1, %vm206_vm1  ;;  %vm210_vm3 = vcmp.ge.s32.totalorder %v209_v36, 0  ;;  %vm215_vm7 = vcmp.lt.s32.totalorder %v213_v57, 128 }
  0x40   : > { %324 = vrot.lane.b32.xlu0 %v1668_v12, %s1481_s23  ;;  %v240_v35 = vsel %vm239_vm2, 65537, %v1480_v0  ;;  %vm260_vm5 = vmpackc.low %vm210_vm3, %vm210_vm3 }
  0x41   : > { %v244_v37 = vrot.slane %v240_v35, %v1791_v34  ;;  %v261_v45 = vsel %vm260_vm5, 65537, %v1480_v0  ;;  %vm283_vm8 = vmpackc.low %vm215_vm7, %vm215_vm7 }
  0x42   : > { %v265_v49 = vrot.slane %v261_v45, %v1791_v34 }
  0x43   : > { %326 = vrot.lane.b32.xlu1 %v1686_v17, %s1481_s23  ;;  %vm1795_vm4 = vcmp.ne.s16.totalorder %v244_v37, 0 }
  0x44   : > { %231 = vrot.lane.b32.xlu0 %v1692_v18, %s1481_s23  ;;  %vm1817_vm6 = vcmp.ne.s16.totalorder %v265_v49, 0  ;;  %v1888_v49 = vld [vmem:[%s2204_s1] ss:$8 sps:$4 sm:$0xff]  }
  0x47   : > { %444 = vrot.lane.b32.xlu1 %v1710_v23, %s1481_s23 }
  0x48   : > { %385 = vrot.lane.b32.xlu0 %v1716_v24, %s1481_s23 }
  0x4b   : > { %336 = vrot.lane.b32.xlu1 %v1668_v12, %s1482_s4 }
  0x4c   : > { %250 = vrot.lane.b32.xlu0 %v1650_v8, %s1482_s4 }
  0x4f   : > { %454 = vrot.lane.b32.xlu1 %v1662_v11, %s1482_s4 }
  0x50   : > { %395 = vrot.lane.b32.xlu0 %v1637_v4, %s1482_s4 }
  0x53   : > { %338 = vrot.lane.b32.xlu1 %v1686_v17, %s1482_s4 }
  0x54   : > { %252 = vrot.lane.b32.xlu0 %v1692_v18, %s1482_s4 }
  0x57   : > { %456 = vrot.lane.b32.xlu1 %v1710_v23, %s1482_s4 }
  0x58   : > { %397 = vrot.lane.b32.xlu0 %v1716_v24, %s1482_s4 }
  0x5b   : > { %350 = vrot.lane.b32.xlu1 %v1668_v12, %s1483_s6 }
  0x5c   : > { %273 = vrot.lane.b32.xlu0 %v1650_v8, %s1483_s6 }
  0x5f   : > { %468 = vrot.lane.b32.xlu1 %v1662_v11, %s1483_s6 }
  0x60   : > { %409 = vrot.lane.b32.xlu0 %v1637_v4, %s1483_s6 }
  0x63   : > { %352 = vrot.lane.b32.xlu1 %v1686_v17, %s1483_s6 }
  0x64   : > { %275 = vrot.lane.b32.xlu0 %v1692_v18, %s1483_s6 }
  0x67   : > { %470 = vrot.lane.b32.xlu1 %v1710_v23, %s1483_s6 }
  0x68   : > { %411 = vrot.lane.b32.xlu0 %v1716_v24, %s1483_s6 }
  0x6b   : > { %362 = vrot.lane.b32.xlu1 %v1668_v12, %s1484_s17 }
  0x6c   : > { %294 = vrot.lane.b32.xlu0 %v1650_v8, %s1484_s17 }
  0x6f   : > { %480 = vrot.lane.b32.xlu1 %v1662_v11, %s1484_s17 }
  0x70   : > { %421 = vrot.lane.b32.xlu0 %v1637_v4, %s1484_s17 }
  0x73   : > { %364 = vrot.lane.b32.xlu1 %v1686_v17, %s1484_s17 }
  0x74   : > { %296 = vrot.lane.b32.xlu0 %v1692_v18, %s1484_s17 }
  0x77   : > { %482 = vrot.lane.b32.xlu1 %v1710_v23, %s1484_s17 }
  0x78   : > { %423 = vrot.lane.b32.xlu0 %v1716_v24, %s1484_s17 }
  0x7b   : > { %539 = vperm.xlu1 %1372, %v200_v26  }
  0x7c   : > { %534 = vperm.xlu0 %1371, %v199_v27   ;;  %v284_v27 = vsel %vm283_vm8, 65537, %v1480_v0 }
  0x7d   : > { %v288_v32 = vrot.slane %v284_v27, %v1791_v34 }
  0x7f   : > { %544 = vperm.xlu1 %1372, %v201_v28   ;;  %vm1843_vm10 = vcmp.ne.s16.totalorder %v288_v32, 0 }
  0x80   : > { %549 = vperm.xlu0 %1371, %v202_v29   ;;  %v217_v29 = vadd.s32 2, %v204_v31 }
  0x82   : > { %vm219_vm9 = vcmp.lt.s32.totalorder %v217_v29, 128 }
  0x83   : > { %vm304_vm11 = vmpackc.low %vm219_vm9, %vm219_vm9 }
  0x84   : > { %v305_v31 = vsel %vm304_vm11, 65537, %v1480_v0 }
  0x85   : > { %v309_v37 = vrot.slane %v305_v31, %v1791_v34 }
  0x87   : > { %vm1869_vm12 = vcmp.ne.s16.totalorder %v309_v37, 0 }
  0xad   : > { %v384_v38 = vpop.permute.xlu1 %383 }
  0xae   : > { %v230_v39 = vpop.permute.xlu0 %229  ;;  %v391_v43 = vsel %vm1795_vm4, %v384_v38, 0 }
  0xaf   : > { %v246_v44 = vsel %vm1795_vm4, %v230_v39, 0 }
  0xb1   : > { %v443_v41 = vpop.permute.xlu1 %442 }
  0xb2   : > { %v325_v42 = vpop.permute.xlu0 %324  ;;  %1292 = vmatprep.subr.msk.bf16.mxu1 %vm1795_vm4, %v443_v41 }
  0xb3   : > { %1284 = vmatprep.subr.msk.bf16.mxu0 %vm1795_vm4, %v325_v42  ;;  %631 = vmatpush1.bf16.msra.mxu1 %v391_v43 }
  0xb4   : > { %578 = vmatpush1.bf16.msra.mxu0 %v246_v44 }
  0xb5   : > { %v327_v46 = vpop.permute.xlu1 %326 }
  0xb6   : > { %v232_v47 = vpop.permute.xlu0 %231  ;;  %1285 = vmatprep.subr.msk.bf16.mxu0 %vm1795_vm4, %v327_v46 }
  0xb7   : > { %v247_v48 = vsel %vm1795_vm4, %v232_v47, 0 }
  0xb8   : > { %580 = vmatpush1.bf16.msra.mxu0 %v247_v48 }
  0xb9   : > { %v445_v50 = vpop.permute.xlu1 %444 }
  0xba   : > { %v386_v51 = vpop.permute.xlu0 %385  ;;  %1293 = vmatprep.subr.msk.bf16.mxu1 %vm1795_vm4, %v445_v50  ;;  %v1893_v50 = vld [vmem:[%s2204_s1 + $0x14] ss:$8 sps:$4 sm:$0xff]  }
  0xbb   : > { %v392_v52 = vsel %vm1795_vm4, %v386_v51, 0 }
  0xbc   : > { %633 = vmatpush1.bf16.msra.mxu1 %v392_v52 }
  0xbd   : > { %v337_v54 = vpop.permute.xlu1 %336 }
  0xbe   : > { %v251_v55 = vpop.permute.xlu0 %250  ;;  %1286 = vmatprep.subr.msk.bf16.mxu0 %vm1817_vm6, %v337_v54 }
  0xbf   : > { %v267_v56 = vsel %vm1817_vm6, %v251_v55, 0  ;;  %v1906_v55 = vld [vmem:[%s2204_s1 + $0x10] ss:$8 sps:$4 sm:$0xff]  }
  0xc0   : > { %582 = vmatpush1.bf16.msra.mxu0 %v267_v56 }
  0xc1   : > { %v455_v58 = vpop.permute.xlu1 %454 }
  0xc2   : > { %v396_v59 = vpop.permute.xlu0 %395  ;;  %1294 = vmatprep.subr.msk.bf16.mxu1 %vm1817_vm6, %v455_v58 }
  0xc3   : > { %v403_v60 = vsel %vm1817_vm6, %v396_v59, 0 }
  0xc4   : > { %635 = vmatpush1.bf16.msra.mxu1 %v403_v60 }
  0xc5   : > { %v339_v61 = vpop.permute.xlu1 %338 }
  0xc6   : > { %v253_v62 = vpop.permute.xlu0 %252  ;;  %1287 = vmatprep.subr.msk.bf16.mxu0 %vm1817_vm6, %v339_v61 }
  0xc7   : > { %v268_v63 = vsel %vm1817_vm6, %v253_v62, 0 }
  0xc8   : > { %584 = vmatpush1.bf16.msra.mxu0 %v268_v63 }
  0xc9   : > { %v457_v26 = vpop.permute.xlu1 %456  ;;  %585 = vmatprep.subr.bf16.mxu0 %v1668_v12 }
  0xca   : > { %v398_v28 = vpop.permute.xlu0 %397  ;;  %1295 = vmatprep.subr.msk.bf16.mxu1 %vm1817_vm6, %v457_v26 }
  0xcb   : > { %v404_v30 = vsel %vm1817_vm6, %v398_v28, 0 }
  0xcc   : > { %586 = vmatpush1.bf16.msra.mxu0 %v1650_v8  ;;  %637 = vmatpush1.bf16.msra.mxu1 %v404_v30 }
  0xcd   : > { %v351_v33 = vpop.permute.xlu1 %350  ;;  %587 = vmatprep.subr.bf16.mxu0 %v1686_v17  ;;  %638 = vmatprep.subr.bf16.mxu1 %v1662_v11 }
  0xce   : > { %v274_v12 = vpop.permute.xlu0 %273 }
  0xcf   : > { %v290_v11 = vsel %vm1843_vm10, %v274_v12, 0 }
  0xd0   : > { %588 = vmatpush1.bf16.msra.mxu0 %v1692_v18  ;;  %639 = vmatpush1.bf16.msra.mxu1 %v1637_v4 }
  0xd1   : > { %1288 = vmatprep.subr.msk.bf16.mxu0 %vm1843_vm10, %v351_v33  ;;  %v469_v8 = vpop.permute.xlu1 %468  ;;  %640 = vmatprep.subr.bf16.mxu1 %v1710_v23 }
  0xd2   : > { %v410_v17 = vpop.permute.xlu0 %409 }
  0xd3   : > { %v417_v23 = vsel %vm1843_vm10, %v410_v17, 0 }
  0xd4   : > { %590 = vmatpush1.bf16.msra.mxu0 %v290_v11  ;;  %641 = vmatpush1.bf16.msra.mxu1 %v1716_v24 }
  0xd5   : > { %1296 = vmatprep.subr.msk.bf16.mxu1 %vm1843_vm10, %v469_v8  ;;  %v353_v4 = vpop.permute.xlu1 %352 }
  0xd6   : > { %v276_v18 = vpop.permute.xlu0 %275  ;;  %1289 = vmatprep.subr.msk.bf16.mxu0 %vm1843_vm10, %v353_v4 }
  0xd7   : > { %v291_v36 = vsel %vm1843_vm10, %v276_v18, 0 }
  0xd8   : > { %592 = vmatpush1.bf16.msra.mxu0 %v291_v36  ;;  %643 = vmatpush1.bf16.msra.mxu1 %v417_v23 }
  0xd9   : > { %v471_v24 = vpop.permute.xlu1 %470 }
  0xda   : > { %v412_v0 = vpop.permute.xlu0 %411  ;;  %1297 = vmatprep.subr.msk.bf16.mxu1 %vm1843_vm10, %v471_v24 }
  0xdb   : > { %v418_v38 = vsel %vm1843_vm10, %v412_v0, 0 }
  0xdc   : > { %645 = vmatpush1.bf16.msra.mxu1 %v418_v38 }
  0xdd   : > { %v363_v41 = vpop.permute.xlu1 %362 }
  0xde   : > { %v295_v42 = vpop.permute.xlu0 %294  ;;  %1290 = vmatprep.subr.msk.bf16.mxu0 %vm1869_vm12, %v363_v41 }
  0xdf   : > { %v311_v34 = vsel %vm1869_vm12, %v295_v42, 0 }
  0xe0   : > { %594 = vmatpush1.bf16.msra.mxu0 %v311_v34 }
  0xe1   : > { %v481_v43 = vpop.permute.xlu1 %480 }
  0xe2   : > { %v422_v44 = vpop.permute.xlu0 %421  ;;  %1298 = vmatprep.subr.msk.bf16.mxu1 %vm1869_vm12, %v481_v43 }
  0xe3   : > { %v429_v45 = vsel %vm1869_vm12, %v422_v44, 0 }
  0xe4   : > { %647 = vmatpush1.bf16.msra.mxu1 %v429_v45 }
  0xe5   : > { %v365_v46 = vpop.permute.xlu1 %364 }
  0xe6   : > { %v297_v47 = vpop.permute.xlu0 %296  ;;  %1291 = vmatprep.subr.msk.bf16.mxu0 %vm1869_vm12, %v365_v46 }
  0xe7   : > { %v312_v48 = vsel %vm1869_vm12, %v297_v47, 0 }
  0xe8   : > { %596 = vmatpush1.bf16.msra.mxu0 %v312_v48 }
  0xe9   : > { %v483_v51 = vpop.permute.xlu1 %482 }
  0xea   : > { %v424_v52 = vpop.permute.xlu0 %423  ;;  %1299 = vmatprep.subr.msk.bf16.mxu1 %vm1869_vm12, %v483_v51 }
  0xeb   : > { %v430_v54 = vsel %vm1869_vm12, %v424_v52, 0  ;;  %610 = vmatmul.mubr.bf16.vlgmr.msra.gmra.mrb[0].mxu0 %v1888_v49 }
  0xec   : > { %649 = vmatpush1.bf16.msra.mxu1 %v430_v54  ;;  %1243 = vmatprep.mubr.msk.bf16.mxu0 %vm570_vm0, %v1893_v50 }
  0xef   : > { %663 = vmatmul.mubr.bf16.vlgmr.msra.gmra.mrb[0].mxu1 %v1888_v49 }
  0xf0   : > { %1245 = vmatprep.mubr.msk.bf16.mxu1 %vm570_vm0, %v1893_v50 }
  0xf3   : > { %620 = vmatmul.mubr.bf16.gmra.mrb[4].mxu0 %v1906_v55 }
  0xf4   : > { %1246 = vmatprep.mubr.msk.bf16.mxu0 %vm570_vm0, %v1757_v25 }
  0xf7   : > { %673 = vmatmul.mubr.bf16.gmra.mrb[4].mxu1 %v1906_v55 }
  0xf8   : > { %1248 = vmatprep.mubr.msk.bf16.mxu1 %vm570_vm0, %v1757_v25 }
  0xfa   : > { %v1919_v60 = vpop.permute.xlu1 %539 }
  0xfb   : > { %v1916_v56 = vpop.permute.xlu0 %534 }
  0xfe   : > { %v1929_v18 = vpop.permute.xlu1 %544 }
  0xff   : > { %v1937_v42 = vpop.permute.xlu0 %549 }
 0x1be   : > { %v611_v57 = vpop.f32.mrb[0].mxu0 }
 0x1bf   : > { %v612_v58 = vadd.f32 %v611_v57, %v1916_v56  ;;  %v613_v59 = vpop.f32.mrb[1].mxu0 }
 0x1c0   : > { %v614_v61 = vadd.f32 %v613_v59, %v1916_v56  ;;  %v615_v62 = vpop.f32.mrb[2].mxu0 }
 0x1c1   : > { %v616_v63 = vadd.f32 %v615_v62, %v1919_v60  ;;  %v617_v26 = vpop.f32.mrb[3].mxu0  ;;  %v683_v29 = vmax.f32 %v612_v58, 0.0 }
 0x1c2   : > { %v618_v27 = vadd.f32 %v617_v26, %v1919_v60  ;;  %v664_v28 = vpop.f32.mrb[0].mxu1  ;;  %v684_v33 = vmax.f32 %v614_v61, 0.0 }
 0x1c3   : > { %v687_v30 = vmax.f32 %v616_v63, 0.0  ;;  %v665_v25 = vadd.f32 %v664_v28, %v1916_v56  ;;  %v666_v32 = vpop.f32.mrb[1].mxu1 }
 0x1c4   : > { %v688_v12 = vmax.f32 %v618_v27, 0.0  ;;  %v667_v8 = vadd.f32 %v666_v32, %v1916_v56  ;;  %v668_v17 = vpop.f32.mrb[2].mxu1 }
 0x1c5   : > { %v1926_v11 = vpack.c.bf16 %v687_v30, %v683_v29  ;;  %v669_v31 = vadd.f32 %v668_v17, %v1919_v60  ;;  %v670_v4 = vpop.f32.mrb[3].mxu1  ;;  %v685_v24 = vmax.f32 %v665_v25, 0.0 }
 0x1c6   : > { %v1931_v23 = vpack.c.bf16 %v688_v12, %v684_v33  ;;  %v671_v36 = vadd.f32 %v670_v4, %v1919_v60  ;;  %v621_v37 = vpop.f32.mrb[4].mxu0  ;;  %v686_v34 = vmax.f32 %v667_v8, 0.0 }
 0x1c7   : > { %v689_v0 = vmax.f32 %v669_v31, 0.0  ;;  %v622_v38 = vadd.f32 %v621_v37, %v1929_v18  ;;  %v623_v41 = vpop.f32.mrb[5].mxu0  ;;  %709 = vrot.lane.b32.xlu1 %v1926_v11, %s1481_s23 }
 0x1c8   : > { %v690_v43 = vmax.f32 %v671_v36, 0.0  ;;  %v624_v44 = vadd.f32 %v623_v41, %v1929_v18  ;;  %v625_v45 = vpop.f32.mrb[6].mxu0  ;;  %761 = vrot.lane.b32.xlu0 %v1931_v23, %s1481_s23 }
 0x1c9   : > { %v1942_v46 = vpack.c.bf16 %v689_v0, %v685_v24  ;;  %v626_v47 = vadd.f32 %v625_v45, %v1937_v42  ;;  %v627_v48 = vpop.f32.mrb[7].mxu0  ;;  %v691_v57 = vmax.f32 %v622_v38, 0.0 }
 0x1ca   : > { %v1945_v51 = vpack.c.bf16 %v690_v43, %v686_v34  ;;  %v628_v52 = vadd.f32 %v627_v48, %v1937_v42  ;;  %v674_v54 = vpop.f32.mrb[4].mxu1  ;;  %v692_v62 = vmax.f32 %v624_v44, 0.0 }
 0x1cb   : > { %v695_v58 = vmax.f32 %v626_v47, 0.0  ;;  %v675_v59 = vadd.f32 %v674_v54, %v1929_v18  ;;  %v676_v61 = vpop.f32.mrb[5].mxu1  ;;  %813 = vrot.lane.b32.xlu1 %v1942_v46, %s1481_s23 }
 0x1cc   : > { %v696_v63 = vmax.f32 %v628_v52, 0.0  ;;  %v677_v26 = vadd.f32 %v676_v61, %v1929_v18  ;;  %v678_v27 = vpop.f32.mrb[6].mxu1  ;;  %865 = vrot.lane.b32.xlu0 %v1945_v51, %s1481_s23 }
 0x1cd   : > { %v1954_v28 = vpack.c.bf16 %v695_v58, %v691_v57  ;;  %v679_v29 = vadd.f32 %v678_v27, %v1937_v42  ;;  %v680_v30 = vpop.f32.mrb[7].mxu1  ;;  %v693_v33 = vmax.f32 %v675_v59, 0.0 }
 0x1ce   : > { %v1957_v25 = vpack.c.bf16 %v696_v63, %v692_v62  ;;  %v681_v32 = vadd.f32 %v680_v30, %v1937_v42  ;;  %v694_v8 = vmax.f32 %v677_v26, 0.0 }
 0x1cf   : > { %v697_v12 = vmax.f32 %v679_v29, 0.0  ;;  %721 = vrot.lane.b32.xlu1 %v1926_v11, %s1482_s4 }
 0x1d0   : > { %v698_v17 = vmax.f32 %v681_v32, 0.0  ;;  %773 = vrot.lane.b32.xlu0 %v1931_v23, %s1482_s4 }
 0x1d1   : > { %v1964_v31 = vpack.c.bf16 %v697_v12, %v693_v33 }
 0x1d2   : > { %v1966_v4 = vpack.c.bf16 %v698_v17, %v694_v8 }
 0x1d3   : > { %825 = vrot.lane.b32.xlu1 %v1942_v46, %s1482_s4 }
 0x1d4   : > { %877 = vrot.lane.b32.xlu0 %v1945_v51, %s1482_s4 }
 0x1d7   : > { %735 = vrot.lane.b32.xlu1 %v1926_v11, %s1483_s6 }
 0x1d8   : > { %787 = vrot.lane.b32.xlu0 %v1931_v23, %s1483_s6 }
 0x1db   : > { %839 = vrot.lane.b32.xlu1 %v1942_v46, %s1483_s6 }
 0x1dc   : > { %891 = vrot.lane.b32.xlu0 %v1945_v51, %s1483_s6 }
 0x1df   : > { %711 = vrot.lane.b32.xlu1 %v1954_v28, %s1481_s23 }
 0x1e0   : > { %763 = vrot.lane.b32.xlu0 %v1957_v25, %s1481_s23 }
 0x1e3   : > { %815 = vrot.lane.b32.xlu1 %v1964_v31, %s1481_s23 }
 0x1e4   : > { %867 = vrot.lane.b32.xlu0 %v1966_v4, %s1481_s23  ;;  %s2108_s23 = scalar_lea.vmem [#allocation6], %s1224_s9  ;;  %s1283_s9 = sshll.u32 %s1529_s16, 11 }
 0x1e7   : > { %723 = vrot.lane.b32.xlu1 %v1954_v28, %s1482_s4 }
 0x1e8   : > { %775 = vrot.lane.b32.xlu0 %v1957_v25, %s1482_s4 }
 0x1eb   : > { %827 = vrot.lane.b32.xlu1 %v1964_v31, %s1482_s4 }
 0x1ec   : > { %879 = vrot.lane.b32.xlu0 %v1966_v4, %s1482_s4  ;;  %s1143_s4 = sshll.u32 %s2108_s23, 4  ;;  %s2155_s4 = int_to_ptr.vmem [resolvable:$true] %s1143_s4 }
 0x1ed   : > { %s1409_s26 = scalar_lea.vmem %s2155_s4, 2048  ;;  %p1416_p8 = scmp.lt.s32.totalorder %s2155_s4, %s1414_s28 }
 0x1ee   : > { %p1410_p6 = scmp.ne.s32.totalorder %s2155_s4, %s1409_s26  ;;  %p1417_p10 = scmp.lt.s32.totalorder %s1415_s29, %s1409_s26 }
 0x1ef   : > { %747 = vrot.lane.b32.xlu1 %v1926_v11, %s1484_s17 }
 0x1f0   : > { %799 = vrot.lane.b32.xlu0 %v1931_v23, %s1484_s17  ;;  %p1411_p12 = pnand %p1410_p6, %p2221_p11  ;;  %p1418_p0 = por %p1417_p10, %p1416_p8 }
 0x1f2   : > { %p1412_p13 = pneg %p1411_p12 }
 0x1f3   : > { %737 = vrot.lane.b32.xlu1 %v1954_v28, %s1483_s6 }
 0x1f4   : > { %903 = vrot.lane.b32.xlu0 %v1945_v51, %s1484_s17  ;;  %p1419_p2 = pnand %p1418_p0, %p1412_p13 }
 0x1f7   : > { %841 = vrot.lane.b32.xlu1 %v1964_v31, %s1483_s6 }
 0x1f8   : > { %789 = vrot.lane.b32.xlu0 %v1957_v25, %s1483_s6 }
 0x1fb   : > { %851 = vrot.lane.b32.xlu1 %v1942_v46, %s1484_s17 }
 0x1fc   : > { %893 = vrot.lane.b32.xlu0 %v1966_v4, %s1483_s6 }
 0x1ff   : > { %749 = vrot.lane.b32.xlu1 %v1954_v28, %s1484_s17 }
 0x200   : > { %801 = vrot.lane.b32.xlu0 %v1957_v25, %s1484_s17 }
 0x203   : > { %853 = vrot.lane.b32.xlu1 %v1964_v31, %s1484_s17 }
 0x204   : > { %905 = vrot.lane.b32.xlu0 %v1966_v4, %s1484_s17  ;;  %s2153_s17 = scalar_lea.hbm %s2206_s3, %s1283_s9 }
 0x239   : > { %v710_v36 = vpop.permute.xlu1 %709 }
 0x23a   : > { %v717_v37 = vsel %vm1795_vm4, %v710_v36, 0  ;;  %v762_v24 = vpop.permute.xlu0 %761 }
 0x23b   : > { %1300 = vmatprep.subr.msk.bf16.mxu0 %vm1795_vm4, %v762_v24 }
 0x23c   : > { %956 = vmatpush1.bf16.msra.mxu0 %v717_v37 }
 0x23d   : > { %v814_v0 = vpop.permute.xlu1 %813 }
 0x23e   : > { %v821_v38 = vsel %vm1795_vm4, %v814_v0, 0  ;;  %v866_v41 = vpop.permute.xlu0 %865 }
 0x23f   : > { %1308 = vmatprep.subr.msk.bf16.mxu1 %vm1795_vm4, %v866_v41 }
 0x240   : > { %1009 = vmatpush1.bf16.msra.mxu1 %v821_v38 }
 0x241   : > { %v722_v34 = vpop.permute.xlu1 %721 }
 0x242   : > { %v774_v43 = vpop.permute.xlu0 %773  ;;  %v729_v26 = vsel %vm1817_vm6, %v722_v34, 0 }
 0x245   : > { %v826_v44 = vpop.permute.xlu1 %825 }
 0x246   : > { %v878_v45 = vpop.permute.xlu0 %877  ;;  %v833_v32 = vsel %vm1817_vm6, %v826_v44, 0 }
 0x249   : > { %v736_v47 = vpop.permute.xlu1 %735 }
 0x24a   : > { %v788_v48 = vpop.permute.xlu0 %787 }
 0x24d   : > { %v840_v52 = vpop.permute.xlu1 %839 }
 0x24e   : > { %v892_v54 = vpop.permute.xlu0 %891 }
 0x251   : > { %v712_v57 = vpop.permute.xlu1 %711 }
 0x252   : > { %v718_v58 = vsel %vm1795_vm4, %v712_v57, 0  ;;  %v764_v59 = vpop.permute.xlu0 %763 }
 0x253   : > { %1301 = vmatprep.subr.msk.bf16.mxu0 %vm1795_vm4, %v764_v59 }
 0x254   : > { %958 = vmatpush1.bf16.msra.mxu0 %v718_v58 }
 0x255   : > { %1302 = vmatprep.subr.msk.bf16.mxu0 %vm1817_vm6, %v774_v43  ;;  %v816_v61 = vpop.permute.xlu1 %815 }
 0x256   : > { %v822_v62 = vsel %vm1795_vm4, %v816_v61, 0  ;;  %v868_v63 = vpop.permute.xlu0 %867 }
 0x257   : > { %1309 = vmatprep.subr.msk.bf16.mxu1 %vm1795_vm4, %v868_v63 }
 0x258   : > { %960 = vmatpush1.bf16.msra.mxu0 %v729_v26  ;;  %1011 = vmatpush1.bf16.msra.mxu1 %v822_v62 }
 0x259   : > { %1310 = vmatprep.subr.msk.bf16.mxu1 %vm1817_vm6, %v878_v45  ;;  %v724_v27 = vpop.permute.xlu1 %723 }
 0x25a   : > { %v730_v29 = vsel %vm1817_vm6, %v724_v27, 0  ;;  %v776_v30 = vpop.permute.xlu0 %775 }
 0x25b   : > { %1303 = vmatprep.subr.msk.bf16.mxu0 %vm1817_vm6, %v776_v30 }
 0x25c   : > { %962 = vmatpush1.bf16.msra.mxu0 %v730_v29  ;;  %1013 = vmatpush1.bf16.msra.mxu1 %v833_v32 }
 0x25d   : > { %963 = vmatprep.subr.bf16.mxu0 %v1931_v23  ;;  %v828_v40 = vpop.permute.xlu1 %827 }
 0x25e   : > { %v834_v33 = vsel %vm1817_vm6, %v828_v40, 0  ;;  %v880_v12 = vpop.permute.xlu0 %879 }
 0x25f   : > { %1311 = vmatprep.subr.msk.bf16.mxu1 %vm1817_vm6, %v880_v12 }
 0x260   : > { %964 = vmatpush1.bf16.msra.mxu0 %v1926_v11  ;;  %1015 = vmatpush1.bf16.msra.mxu1 %v834_v33  ;;  %v743_v11 = vsel %vm1843_vm10, %v736_v47, 0 }
 0x261   : > { %965 = vmatprep.subr.bf16.mxu0 %v1957_v25  ;;  %1016 = vmatprep.subr.bf16.mxu1 %v1945_v51  ;;  %v748_v8 = vpop.permute.xlu1 %747 }
 0x262   : > { %v800_v17 = vpop.permute.xlu0 %799  ;;  %v755_v36 = vsel %vm1869_vm12, %v748_v8, 0 }
 0x264   : > { %966 = vmatpush1.bf16.msra.mxu0 %v1954_v28  ;;  %1017 = vmatpush1.bf16.msra.mxu1 %v1942_v46  ;;  %v847_v46 = vsel %vm1843_vm10, %v840_v52, 0 }
 0x265   : > { %1304 = vmatprep.subr.msk.bf16.mxu0 %vm1843_vm10, %v788_v48  ;;  %1018 = vmatprep.subr.bf16.mxu1 %v1966_v4  ;;  %v738_v53 = vpop.permute.xlu1 %737 }
 0x266   : > { %v904_v23 = vpop.permute.xlu0 %903  ;;  %v744_v25 = vsel %vm1843_vm10, %v738_v53, 0 }
 0x268   : > { %968 = vmatpush1.bf16.msra.mxu0 %v743_v11  ;;  %1019 = vmatpush1.bf16.msra.mxu1 %v1964_v31 }
 0x269   : > { %1312 = vmatprep.subr.msk.bf16.mxu1 %vm1843_vm10, %v892_v54  ;;  %v842_v51 = vpop.permute.xlu1 %841 }
 0x26a   : > { %v790_v28 = vpop.permute.xlu0 %789  ;;  %v848_v37 = vsel %vm1843_vm10, %v842_v51, 0 }
 0x26b   : > { %1305 = vmatprep.subr.msk.bf16.mxu0 %vm1843_vm10, %v790_v28 }
 0x26c   : > { %970 = vmatpush1.bf16.msra.mxu0 %v744_v25  ;;  %1021 = vmatpush1.bf16.msra.mxu1 %v847_v46 }
 0x26d   : > { %1306 = vmatprep.subr.msk.bf16.mxu0 %vm1869_vm12, %v800_v17  ;;  %v852_v31 = vpop.permute.xlu1 %851 }
 0x26e   : > { %v894_v4 = vpop.permute.xlu0 %893  ;;  %v859_v41 = vsel %vm1869_vm12, %v852_v31, 0 }
 0x26f   : > { %1313 = vmatprep.subr.msk.bf16.mxu1 %vm1843_vm10, %v894_v4 }
 0x270   : > { %972 = vmatpush1.bf16.msra.mxu0 %v755_v36  ;;  %1023 = vmatpush1.bf16.msra.mxu1 %v848_v37 }
 0x271   : > { %1314 = vmatprep.subr.msk.bf16.mxu1 %vm1869_vm12, %v904_v23  ;;  %v750_v24 = vpop.permute.xlu1 %749 }
 0x272   : > { %v756_v0 = vsel %vm1869_vm12, %v750_v24, 0  ;;  %v802_v38 = vpop.permute.xlu0 %801 }
 0x273   : > { %1307 = vmatprep.subr.msk.bf16.mxu0 %vm1869_vm12, %v802_v38 }
 0x274   : > { %974 = vmatpush1.bf16.msra.mxu0 %v756_v0  ;;  %1025 = vmatpush1.bf16.msra.mxu1 %v859_v41 }
 0x275   : > { %v854_v35 = vpop.permute.xlu1 %853 }
 0x276   : > { %v860_v34 = vsel %vm1869_vm12, %v854_v35, 0  ;;  %v906_v43 = vpop.permute.xlu0 %905 }
 0x277   : > { %988 = vmatmul.mubr.bf16.vlgmr.msra.gmra.mrb[8].mxu0 %v1888_v49  ;;  %1315 = vmatprep.subr.msk.bf16.mxu1 %vm1869_vm12, %v906_v43 }
 0x278   : > { %1027 = vmatpush1.bf16.msra.mxu1 %v860_v34  ;;  %1247 = vmatprep.mubr.msk.bf16.mxu0 %vm570_vm0, %v1893_v50 }
 0x27b   : > { %1041 = vmatmul.mubr.bf16.vlgmr.msra.gmra.mrb[8].mxu1 %v1888_v49 }
 0x27c   : > { %1249 = vmatprep.mubr.msk.bf16.mxu1 %vm570_vm0, %v1893_v50 }
 0x27f   : > { %998 = vmatmul.mubr.bf16.gmra.mrb[12].mxu0 %v1906_v55 }
 0x283   : > { %1051 = vmatmul.mubr.bf16.gmra.mrb[12].mxu1 %v1906_v55 }
 0x34a   : > { %v989_v44 = vpop.f32.mrb[8].mxu0 }
 0x34b   : > { %v1061_v45 = vadd.f32 %v989_v44, %v1916_v56  ;;  %v991_v47 = vpop.f32.mrb[9].mxu0 }
 0x34c   : > { %v1077_v39 = vadd.f32 %v991_v47, %v1916_v56  ;;  %v993_v48 = vpop.f32.mrb[10].mxu0 }
 0x34d   : > { %v1069_v52 = vadd.f32 %v1061_v45, %v1633_v3  ;;  %v1062_v54 = vadd.f32 %v993_v48, %v1919_v60  ;;  %v995_v57 = vpop.f32.mrb[11].mxu0 }
 0x34e   : > { %v1085_v49 = vadd.f32 %v1653_v9, %v1077_v39  ;;  %v1078_v50 = vadd.f32 %v995_v57, %v1919_v60  ;;  %v1042_v58 = vpop.f32.mrb[8].mxu1 }
 0x34f   : > { %1073 = vst [vmem:[%s2108_s23] sm:$0xff] %v1069_v52  ;;  %v1070_v55 = vadd.f32 %v1062_v54, %v1640_v5  ;;  %v1094_v3 = vadd.f32 %v1042_v58, %v1916_v56  ;;  %v1044_v59 = vpop.f32.mrb[9].mxu1 }
 0x350   : > { %1254 = vst [vmem:[%s2108_s23 + $0x20] sm:$0xff] %v1085_v49  ;;  %v1086_v9 = vadd.f32 %v1656_v10, %v1078_v50  ;;  %v1111_v61 = vadd.f32 %v1044_v59, %v1916_v56  ;;  %v1046_v62 = vpop.f32.mrb[10].mxu1 }
 0x351   : > { %1074 = vst [vmem:[%s2108_s23 + $0x8] sm:$0xff] %v1070_v55  ;;  %v1102_v63 = vadd.f32 %v1627_v1, %v1094_v3  ;;  %v1095_v26 = vadd.f32 %v1046_v62, %v1919_v60  ;;  %v1048_v27 = vpop.f32.mrb[11].mxu1 }
 0x352   : > { %1255 = vst [vmem:[%s2108_s23 + $0x28] sm:$0xff] %v1086_v9  ;;  %v1119_v5 = vadd.f32 %v1643_v6, %v1111_v61  ;;  %v1112_v29 = vadd.f32 %v1048_v27, %v1919_v60  ;;  %v999_v30 = vpop.f32.mrb[12].mxu0 }
 0x353   : > { %1262 = vst [vmem:[%s2108_s23 + $0x40] sm:$0xff] %v1102_v63  ;;  %v1103_v10 = vadd.f32 %v1630_v2, %v1095_v26  ;;  %v1063_v56 = vadd.f32 %v999_v30, %v1929_v18  ;;  %v1001_v32 = vpop.f32.mrb[13].mxu0 }
 0x354   : > { %1270 = vst [vmem:[%s2108_s23 + $0x60] sm:$0xff] %v1119_v5  ;;  %v1120_v1 = vadd.f32 %v1646_v7, %v1112_v29  ;;  %v1079_v40 = vadd.f32 %v1001_v32, %v1929_v18  ;;  %v1003_v33 = vpop.f32.mrb[14].mxu0 }
 0x355   : > { %1263 = vst [vmem:[%s2108_s23 + $0x48] sm:$0xff] %v1103_v10  ;;  %v1071_v6 = vadd.f32 %v1063_v56, %v1677_v15  ;;  %v1064_v60 = vadd.f32 %v1003_v33, %v1937_v42  ;;  %v1005_v12 = vpop.f32.mrb[15].mxu0 }
 0x356   : > { %1271 = vst [vmem:[%s2108_s23 + $0x68] sm:$0xff] %v1120_v1  ;;  %v1087_v2 = vadd.f32 %v1671_v13, %v1079_v40  ;;  %v1080_v8 = vadd.f32 %v1005_v12, %v1937_v42  ;;  %v1052_v17 = vpop.f32.mrb[12].mxu1 }
 0x357   : > { %1075 = vst [vmem:[%s2108_s23 + $0x10] sm:$0xff] %v1071_v6  ;;  %v1072_v7 = vadd.f32 %v1064_v60, %v1680_v16  ;;  %v1096_v53 = vadd.f32 %v1052_v17, %v1929_v18  ;;  %v1054_v23 = vpop.f32.mrb[13].mxu1 }
 0x358   : > { %1256 = vst [vmem:[%s2108_s23 + $0x30] sm:$0xff] %v1087_v2  ;;  %v1088_v15 = vadd.f32 %v1674_v14, %v1080_v8  ;;  %v1113_v11 = vadd.f32 %v1054_v23, %v1929_v18  ;;  %v1056_v51 = vpop.f32.mrb[14].mxu1 }
 0x359   : > { %1076 = vst [vmem:[%s2108_s23 + $0x18] sm:$0xff] %v1072_v7  ;;  %v1104_v13 = vadd.f32 %v1701_v21, %v1096_v53  ;;  %v1097_v16 = vadd.f32 %v1056_v51, %v1937_v42  ;;  %v1058_v28 = vpop.f32.mrb[15].mxu1 }
 0x35a   : > { %1257 = vst [vmem:[%s2108_s23 + $0x38] sm:$0xff] %v1088_v15  ;;  %v1121_v46 = vadd.f32 %v1695_v19, %v1113_v11  ;;  %v1114_v14 = vadd.f32 %v1058_v28, %v1937_v42 }
 0x35b   : > { %1264 = vst [vmem:[%s2108_s23 + $0x50] sm:$0xff] %v1104_v13  ;;  %v1105_v18 = vadd.f32 %v1704_v22, %v1097_v16 }
 0x35c   : > { %1272 = vst [vmem:[%s2108_s23 + $0x70] sm:$0xff] %v1121_v46  ;;  %v1122_v21 = vadd.f32 %v1698_v20, %v1114_v14 }
 0x35d   : > { %1265 = vst [vmem:[%s2108_s23 + $0x58] sm:$0xff] %v1105_v18 }
 0x35e   : > { %1273 = vst [vmem:[%s2108_s23 + $0x78] sm:$0xff] %v1122_v21 }
 0x35f   : > { %1422 = shalt.err (!%p1419_p2)
}
 0x360   : > { %s1423_s30 = scalar_lea.hbm %s2153_s17, 2048  ;;  %s1427_s7 = scalar_lea.hbm %s2206_s3, 4096 }
 0x361   : > { %p1424_p4 = scmp.ne.s32.totalorder %s2153_s17, %s1423_s30  ;;  %p1428_p9 = scmp.lt.u32.totalorder %s2153_s17, %s2206_s3 }
 0x362   : > { %p1429_p1 = scmp.lt.u32.totalorder %s1427_s7, %s1423_s30  ;;  %p1431_p6 = scmp.lt.u32.totalorder %s1423_s30, %s2153_s17 }
 0x363   : > { %p1425_p5 = pnand %p1424_p4, %p2221_p11 }
 0x364   : > { %p1430_p3 = por %p1429_p1, %p1428_p9 }
 0x365   : > { %p1426_p7 = pneg %p1425_p5 }
 0x366   : > { %p1432_p12 = por %p1431_p6, %p1430_p3 }
 0x368   : > { %p1433_p13 = pnand %p1432_p12, %p1426_p7 }
 0x36a   : > { %1436 = shalt.err (!%p1433_p13)
}
 0x36b   : > { %s1486_s20 = smov 128   ;;  %s1487_s23 = smov 8  }
 0x36c   : > { %1318 = dma.vmem_to_hbm [thread:$0]  (%p2221_p11), %s2155_s4, 2048, %s2153_s17, %s1129_s22, %s1486_s20, %s1486_s20, %s1487_s23  }
 0x36d PF: > { %s1158_s9 = sand.u32 1, %s1463_s12   ;;  %p2222_p8 = scmp.ne.s32.totalorder %s2211_s25, 0 }
 0x36e   : > { %p2223_p10 = scmp.ge.s32.totalorder %s1475_s15, 2  ;;  %s1159_s6 = scalar_lea.sflag [#allocation5], %s1158_s9 }
 0x370   : > { %p1325_p0 = pnand %p2223_p10, %p2222_p8 }
 0x372   : > { %1458 = dma.done.wait (!%p1325_p0), %s1159_s6, 2048  }
 0x373   : > { %1460 = vsyncadd (!%p1325_p0), %s1159_s6, 4294965248  ;;  %p16_p2 = scmp.ge.s32.totalorder %s1533_s18, 4   ;;  %s2224_s12 = smov %s1467_s13 }
 0x374   : > { %s2225_s13 = smov %s1471_s14  ;;  %s2226_s14 = smov %s1545_s21 }
 0x375   : > { %s2227_s15 = smov %s1533_s18  ;;  %18 = sbr.rel (!%p16_p2) target bundleno = 5 (0x5), region = 83 }
 0x37c   :  { %1164 = vsyncpa [#allocation4], 1 }
 0x37d   :  { %1166 = vsyncpa [#allocation4 + $0x1], 1 }
 0x37e   :  { %1167 = vsyncpa [#allocation5], 1 }
 0x37f   :  { %1169 = vsyncpa [#allocation5 + $0x1], 1 }

</bundles_post_ra>
